<compile_context>
chip_gen: v7x
topology: tpu7x:2x2x1
jax: 0.10.0
libtpu: 0.0.40
codegen_flags: <defaults>
</compile_context>

<pallas_src>
import jax
import jax.numpy as jnp
from jax.experimental import pallas as pl
from jax.experimental.pallas import tpu as pltpu

_NEG_BIG = -1e30  # logit value for padded (non-existent) classes


def _decode_kernel(x_ref, h0_ref, emb_ref,
                   wx_ref, bx_ref,
                   wh_ref, bh_ref,
                   ww_ref, bw_ref,
                   wi_ref, bi_ref,
                   wfc_ref, bfc_ref,
                   out_ref,
                   h_sc, y_sc, xp_sc):
    Bb, T, D = x_ref.shape          # batch slice handled by this grid step
    Cp, E = emb_ref.shape           # padded num_classes, embed dim
    A = wx_ref.shape[1]             # attDim
    S = h_sc.shape[1]               # sDim
    L = out_ref.shape[1]            # max_len_labels
    mmt = wfc_ref.dtype             # matmul-input dtype (f32 or bf16); accum is f32

    # ---- hoisted: xEmbed(x) does not depend on the recurrent state ----------
    x_mm = x_ref[...]                                                # (Bb,T,D)
    xproj = jnp.dot(x_mm.reshape(Bb * T, D), wx_ref[...],
                    preferred_element_type=jnp.float32)
    xp_sc[...] = xproj.reshape(Bb, T, A) + bx_ref[...]               # f32 scratch

    # ---- initial state: h0 and charEmbed(token 0) ---------------------------
    # TODO(synk): start token hard-coded to class id 0, matching charEmbed(zeros)
    h_sc[...] = h0_ref[0].astype(jnp.float32)
    y_sc[...] = jnp.broadcast_to(emb_ref[0:1, :].astype(jnp.float32), (Bb, E))

    # L is small & static -> fully unrolled Python loop so the scheduler can
    # overlap step i's fc/argmax epilogue with step i+1's attention prologue.
    for step in range(L):
        h = h_sc[...]                                   # (Bb,S)  f32
        y_prev = y_sc[...]                              # (Bb,E)  f32

        # ---- fused h-side projection: [sEmbed | W_hr | W_hz | W_hn] ---------
        hproj = jnp.dot(h.astype(mmt), wh_ref[...],
                        preferred_element_type=jnp.float32) + bh_ref[...]  # (Bb,A+3S)
        sproj = hproj[:, :A]
        gh_r = hproj[:, A:A + S]
        gh_z = hproj[:, A + S:A + 2 * S]
        gh_n = hproj[:, A + 2 * S:A + 3 * S]

        # ---- attention scores on the MXU ------------------------------------
        tanh_sum = jnp.tanh(sproj[:, None, :] + xp_sc[...])          # (Bb,T,A) f32
        e = jnp.dot(tanh_sum.reshape(Bb * T, A).astype(mmt), ww_ref[...],
                    preferred_element_type=jnp.float32) + bw_ref[...]  # (Bb*T,1)
        e = e.reshape(Bb, T, 1)
        e_max = jnp.max(e, axis=1, keepdims=True)
        p = jnp.exp(e - e_max)
        denom = jnp.sum(p, axis=1, keepdims=True)
        alpha = p * pl.reciprocal(denom, approx=True)                # (Bb,T,1)

        # ---- context = bmm(alpha, x) (weighted sum over T, f32) -------------
        context = jnp.sum(alpha * x_ref[...].astype(jnp.float32), axis=1)  # (Bb,D)

        # ---- GRU cell; input-side matmul fused over the 3 gates -------------
        yc = jnp.concatenate([y_prev, context], axis=-1).astype(mmt)       # (Bb,E+D)
        gi = jnp.dot(yc, wi_ref[...],
                     preferred_element_type=jnp.float32) + bi_ref[...]     # (Bb,3S)
        r = jax.nn.sigmoid(gi[:, :S] + gh_r)
        z = jax.nn.sigmoid(gi[:, S:2 * S] + gh_z)
        n = jnp.tanh(gi[:, 2 * S:] + r * gh_n)
        h_new = (1.0 - z) * n + z * h
        h_sc[...] = h_new

        # ---- fc + log_softmax over the (lane-dense, padded) class axis ------
        logits = jnp.dot(h_new.astype(mmt), wfc_ref[...],
                         preferred_element_type=jnp.float32) + bfc_ref[...]  # (Bb,Cp)
        lmax = jnp.max(logits, axis=-1, keepdims=True)
        lse = jnp.log(jnp.sum(jnp.exp(logits - lmax), axis=-1, keepdims=True)) + lmax
        lp = (logits - lse).astype(out_ref.dtype)
        out_ref[:, step:step + 1, :] = lp[:, None, :]

        # ---- greedy feedback: y_prev = charEmbed(argmax(logits)) ------------
        # comparison stays in f32 (argmax tie-break = first max, like torch)
        col = jax.lax.broadcasted_iota(jnp.int32, (Bb, Cp), 1)
        idx = jnp.min(jnp.where(logits == lmax, col, Cp), axis=-1, keepdims=True)
        onehot = (col == idx).astype(mmt)                            # padded rows of emb are 0
        y_sc[...] = jnp.dot(onehot, emb_ref[...],
                            preferred_element_type=jnp.float32)


def _full_spec(shape):
    nd = len(shape)

    def idx(i):
        return (0,) * nd

    return pl.BlockSpec(shape, idx)


def attention_recognition_head(x, prev_hidden, params, max_len_labels,
                               *, batch_blocks=1, matmul_dtype=jnp.float32):
    """batch_blocks=2 splits the batch across v7x's two TensorCores;
    matmul_dtype=jnp.bfloat16 enables bf16 matmul inputs (f32 accumulation)
    recommended on v6e/v7x."""
    B, T, D = x.shape
    S = prev_hidden.shape[1]
    C, E = params["emb"].shape
    A = params["wx"].shape[1]
    L = int(max_len_labels)
    G = int(batch_blocks)
    assert B % G == 0, "batch must divide evenly across batch_blocks"
    Bb = B // G
    Cp = ((C + 127) // 128) * 128          # lane-dense padded class dim
    mmt = matmul_dtype

    # ---- pack / fuse parameters once, outside the kernel --------------------
    wh = jnp.concatenate([params["ws"], params["whr"], params["whz"], params["whn"]],
                         axis=1)                                            # [S, A+3S]
    bh = jnp.concatenate([params["bs"], params["bhr"], params["bhz"], params["bhn"]],
                         axis=1)                                            # [1, A+3S]
    wi = jnp.concatenate(
        [jnp.concatenate([params[f"wi{g}_y"], params[f"wi{g}_c"]], axis=0)
         for g in ("r", "z", "n")], axis=1)                                 # [E+D, 3S]
    bi = jnp.concatenate([params["bir"], params["biz"], params["bin"]], axis=1)
    wfc = jnp.pad(params["wfc"], ((0, 0), (0, Cp - C)))                     # zero cols
    bfc = jnp.pad(params["bfc"], ((0, 0), (0, Cp - C)), constant_values=_NEG_BIG)
    emb = jnp.pad(params["emb"], ((0, Cp - C), (0, 0)))                     # zero rows

    # matmul operands in mmt (accumulation stays f32); biases stay f32
    x_mm = x.astype(mmt)
    wx = params["wx"].astype(mmt)
    wh = wh.astype(mmt)
    ww = params["ww"].astype(mmt)
    wi = wi.astype(mmt)
    wfc = wfc.astype(mmt)
    emb = emb.astype(mmt)
    bx, bw = params["bx"], params["bw"]

    h0 = prev_hidden.reshape(G, Bb, S)

    out = pl.pallas_call(
        _decode_kernel,
        out_shape=jax.ShapeDtypeStruct((B, L, Cp), jnp.float32),
        grid=(G,),
        in_specs=[
            pl.BlockSpec((Bb, T, D), lambda i: (i, 0, 0)),    # x (batch slice)
            pl.BlockSpec((1, Bb, S), lambda i: (i, 0, 0)),    # h0 (batch slice)
            _full_spec(emb.shape),
            _full_spec(wx.shape), _full_spec(bx.shape),
            _full_spec(wh.shape), _full_spec(bh.shape),
            _full_spec(ww.shape), _full_spec(bw.shape),
            _full_spec(wi.shape), _full_spec(bi.shape),
            _full_spec(wfc.shape), _full_spec(bfc.shape),
        ],
        out_specs=pl.BlockSpec((Bb, L, Cp), lambda i: (i, 0, 0)),
        scratch_shapes=[pltpu.VMEM((Bb, S), jnp.float32),     # recurrent state
                        pltpu.VMEM((Bb, E), jnp.float32),     # previous-token embedding
                        pltpu.VMEM((Bb, T, A), jnp.float32)], # hoisted xProj
        compiler_params=pltpu.CompilerParams(
            dimension_semantics=("parallel",)),
    )(x_mm, h0, emb, wx, bx, wh, bh, ww, bw, wi, bi, wfc, bfc)

    # [B, L, Cp] -> [L, B, C]  (the module's T x b x num_classes output)
    return jnp.transpose(out, (1, 0, 2))[:, :, :C]


def init_params(key, num_classes, in_planes, s_dim, att_dim, embed_dim):
    ks = iter(jax.random.split(key, 32))

    def w(shape):
        fan_in = max(shape[0], 1)
        scale = 1.0 / float(fan_in) ** 0.5
        return jax.random.uniform(next(ks), shape, jnp.float32, -scale, scale)

    p = {}
    p["emb"] = jax.random.normal(next(ks), (num_classes, embed_dim), jnp.float32)
    # AttentionUnit (weights stored as [in_features, out_features])
    p["wx"] = w((in_planes, att_dim)); p["bx"] = w((1, att_dim))
    p["ws"] = w((s_dim, att_dim));     p["bs"] = w((1, att_dim))
    p["ww"] = w((att_dim, 1));         p["bw"] = w((1, 1))
    # GRU: input weights split into (yPrev part [E,S], context part [D,S]) per gate,
    # equivalent to torch's weight_ih_l0 acting on concat([yPrev, context]).
    for g in ("r", "z", "n"):
        p[f"wi{g}_y"] = w((embed_dim, s_dim))
        p[f"wi{g}_c"] = w((in_planes, s_dim))
        p[f"wh{g}"] = w((s_dim, s_dim))
        p[f"bi{g}"] = w((1, s_dim))
        p[f"bh{g}"] = w((1, s_dim))
    # fc
    p["wfc"] = w((s_dim, num_classes)); p["bfc"] = w((1, num_classes))
    return p


if __name__ == "__main__":
    # small, module-consistent shapes
    num_classes = 16
    in_planes = 32
    s_dim = 32
    att_dim = 32
    max_len_labels = 4
    embed_dim = 64          # self.embedd_size in the module
    B, T = 2, 8

    key = jax.random.PRNGKey(0)
    kx, kh, kp = jax.random.split(key, 3)
    x = jax.random.normal(kx, (B, T, in_planes), jnp.float32)
    prev_hidden = jax.random.normal(kh, (B, s_dim), jnp.float32)
    params = init_params(kp, num_classes, in_planes, s_dim, att_dim, embed_dim)

    # default: single grid step, f32 matmuls (exact reference semantics).
    # on v7x use batch_blocks=2; on v6e/v7x optionally matmul_dtype=jnp.bfloat16.
    log_probs = attention_recognition_head(x, prev_hidden, params, max_len_labels)
    log_probs = jax.block_until_ready(log_probs)

    assert log_probs.shape == (max_len_labels, B, num_classes)
    assert bool(jnp.all(jnp.isfinite(log_probs)))
    print("KERNEL_OK")
</pallas_src>

<mosaic_0001>
module attributes {stable_mosaic.version = 11 : i64} {
  func.func @_decode_kernel(%arg0: i32, %arg1: memref<2x8x32xf32, #tpu.memory_space<vmem>>, %arg2: memref<1x2x32xf32, #tpu.memory_space<vmem>>, %arg3: memref<128x64xf32, #tpu.memory_space<vmem>>, %arg4: memref<32x32xf32, #tpu.memory_space<vmem>>, %arg5: memref<1x32xf32, #tpu.memory_space<vmem>>, %arg6: memref<32x128xf32, #tpu.memory_space<vmem>>, %arg7: memref<1x128xf32, #tpu.memory_space<vmem>>, %arg8: memref<32x1xf32, #tpu.memory_space<vmem>>, %arg9: memref<1x1xf32, #tpu.memory_space<vmem>>, %arg10: memref<96x96xf32, #tpu.memory_space<vmem>>, %arg11: memref<1x96xf32, #tpu.memory_space<vmem>>, %arg12: memref<32x128xf32, #tpu.memory_space<vmem>>, %arg13: memref<1x128xf32, #tpu.memory_space<vmem>>, %arg14: memref<2x4x128xf32, #tpu.memory_space<vmem>>, %arg15: memref<2x32xf32, #tpu.memory_space<vmem>>, %arg16: memref<2x64xf32, #tpu.memory_space<vmem>>, %arg17: memref<2x8x32xf32, #tpu.memory_space<vmem>>) attributes {dimension_semantics = [#tpu.dimension_semantics<parallel>], iteration_bounds = array<i64: 1>, scalar_prefetch = 0 : i64, scratch_operands = 3 : i64, tpu.core_type = #tpu.core_type<tc>, window_params = [{transform_indices = @transform_0, window_bounds = array<i64: 2, 8, 32>}, {transform_indices = @transform_1, window_bounds = array<i64: 1, 2, 32>}, {pipeline_mode = #tpu.pipeline_mode<synchronous>, transform_indices = @transform_2, window_bounds = array<i64: 128, 64>}, {pipeline_mode = #tpu.pipeline_mode<synchronous>, transform_indices = @transform_3, window_bounds = array<i64: 32, 32>}, {pipeline_mode = #tpu.pipeline_mode<synchronous>, transform_indices = @transform_4, window_bounds = array<i64: 1, 32>}, {pipeline_mode = #tpu.pipeline_mode<synchronous>, transform_indices = @transform_5, window_bounds = array<i64: 32, 128>}, {pipeline_mode = #tpu.pipeline_mode<synchronous>, transform_indices = @transform_6, window_bounds = array<i64: 1, 128>}, {pipeline_mode = #tpu.pipeline_mode<synchronous>, transform_indices = @transform_7, window_bounds = array<i64: 32, 1>}, {pipeline_mode = #tpu.pipeline_mode<synchronous>, transform_indices = @transform_8, window_bounds = array<i64: 1, 1>}, {pipeline_mode = #tpu.pipeline_mode<synchronous>, transform_indices = @transform_9, window_bounds = array<i64: 96, 96>}, {pipeline_mode = #tpu.pipeline_mode<synchronous>, transform_indices = @transform_10, window_bounds = array<i64: 1, 96>}, {pipeline_mode = #tpu.pipeline_mode<synchronous>, transform_indices = @transform_11, window_bounds = array<i64: 32, 128>}, {pipeline_mode = #tpu.pipeline_mode<synchronous>, transform_indices = @transform_12, window_bounds = array<i64: 1, 128>}, {transform_indices = @transform_13, window_bounds = array<i64: 2, 4, 128>}]} {
    %c0 = arith.constant 0 : index
    %c0_0 = arith.constant 0 : index
    %c0_1 = arith.constant 0 : index
    %0 = vector.load %arg1[%c0, %c0_0, %c0_1] : memref<2x8x32xf32, #tpu.memory_space<vmem>>, vector<2x8x32xf32>
    %1 = vector.shape_cast %0 : vector<2x8x32xf32> to vector<16x32xf32>
    %c0_2 = arith.constant 0 : index
    %c0_3 = arith.constant 0 : index
    %2 = vector.load %arg4[%c0_2, %c0_3] : memref<32x32xf32, #tpu.memory_space<vmem>>, vector<32x32xf32>
    %cst = arith.constant dense<0.000000e+00> : vector<16x32xf32>
    %3 = tpu.matmul %1, %2, %cst {dimension_numbers = #tpu.dot_dimension_numbers<[1], [0], [0], [1], [0, 0, 1, 1], [], []>} : vector<16x32xf32>, vector<32x32xf32>, vector<16x32xf32> -> vector<16x32xf32>
    %4 = vector.shape_cast %3 : vector<16x32xf32> to vector<2x8x32xf32>
    %c0_4 = arith.constant 0 : index
    %c0_5 = arith.constant 0 : index
    %5 = vector.load %arg5[%c0_4, %c0_5] : memref<1x32xf32, #tpu.memory_space<vmem>>, vector<1x32xf32>
    %6 = vector.shape_cast %5 : vector<1x32xf32> to vector<1x1x32xf32>
    %7 = vector.broadcast %6 : vector<1x1x32xf32> to vector<2x8x32xf32>
    %8 = arith.addf %4, %7 : vector<2x8x32xf32>
    %c0_6 = arith.constant 0 : index
    %c0_7 = arith.constant 0 : index
    %c0_8 = arith.constant 0 : index
    %9 = vector.load %arg17[%c0_6, %c0_7, %c0_8] : memref<2x8x32xf32, #tpu.memory_space<vmem>>, vector<2x8x32xf32>
    tpu.vector_store %arg17[%c0_6, %c0_7, %c0_8], %8 {strides = array<i32>} : memref<2x8x32xf32, #tpu.memory_space<vmem>>, vector<2x8x32xf32>,
    %c0_9 = arith.constant 0 : index
    %c0_10 = arith.constant 0 : index
    %c0_11 = arith.constant 0 : index
    %10 = vector.load %arg2[%c0_9, %c0_10, %c0_11] : memref<1x2x32xf32, #tpu.memory_space<vmem>>, vector<1x2x32xf32>
    %11 = vector.shape_cast %10 : vector<1x2x32xf32> to vector<2x32xf32>
    %c0_12 = arith.constant 0 : index
    %c0_13 = arith.constant 0 : index
    %12 = vector.load %arg15[%c0_12, %c0_13] : memref<2x32xf32, #tpu.memory_space<vmem>>, vector<2x32xf32>
    tpu.vector_store %arg15[%c0_12, %c0_13], %11 {strides = array<i32>} : memref<2x32xf32, #tpu.memory_space<vmem>>, vector<2x32xf32>,
    %c0_14 = arith.constant 0 : index
    %c0_15 = arith.constant 0 : index
    %13 = vector.load %arg3[%c0_14, %c0_15] : memref<128x64xf32, #tpu.memory_space<vmem>>, vector<1x64xf32>
    %14 = vector.shape_cast %13 : vector<1x64xf32> to vector<1x64xf32>
    %15 = vector.broadcast %14 : vector<1x64xf32> to vector<2x64xf32>
    %c0_16 = arith.constant 0 : index
    %c0_17 = arith.constant 0 : index
    %16 = vector.load %arg16[%c0_16, %c0_17] : memref<2x64xf32, #tpu.memory_space<vmem>>, vector<2x64xf32>
    tpu.vector_store %arg16[%c0_16, %c0_17], %15 {strides = array<i32>} : memref<2x64xf32, #tpu.memory_space<vmem>>, vector<2x64xf32>,
    %c0_18 = arith.constant 0 : index
    %c0_19 = arith.constant 0 : index
    %17 = vector.load %arg15[%c0_18, %c0_19] : memref<2x32xf32, #tpu.memory_space<vmem>>, vector<2x32xf32>
    %c0_20 = arith.constant 0 : index
    %c0_21 = arith.constant 0 : index
    %18 = vector.load %arg16[%c0_20, %c0_21] : memref<2x64xf32, #tpu.memory_space<vmem>>, vector<2x64xf32>
    %c0_22 = arith.constant 0 : index
    %c0_23 = arith.constant 0 : index
    %19 = vector.load %arg6[%c0_22, %c0_23] : memref<32x128xf32, #tpu.memory_space<vmem>>, vector<32x128xf32>
    %cst_24 = arith.constant dense<0.000000e+00> : vector<2x128xf32>
    %20 = tpu.matmul %17, %19, %cst_24 {dimension_numbers = #tpu.dot_dimension_numbers<[1], [0], [0], [1], [0, 0, 1, 1], [], []>} : vector<2x32xf32>, vector<32x128xf32>, vector<2x128xf32> -> vector<2x128xf32>
    %c0_25 = arith.constant 0 : index
    %c0_26 = arith.constant 0 : index
    %21 = vector.load %arg7[%c0_25, %c0_26] : memref<1x128xf32, #tpu.memory_space<vmem>>, vector<1x128xf32>
    %22 = vector.broadcast %21 : vector<1x128xf32> to vector<2x128xf32>
    %23 = arith.addf %20, %22 : vector<2x128xf32>
    %24 = vector.extract_strided_slice %23 {offsets = [0, 0], sizes = [2, 32], strides = [1, 1]} : vector<2x128xf32> to vector<2x32xf32>
    %25 = vector.extract_strided_slice %23 {offsets = [0, 32], sizes = [2, 32], strides = [1, 1]} : vector<2x128xf32> to vector<2x32xf32>
    %26 = vector.extract_strided_slice %23 {offsets = [0, 64], sizes = [2, 32], strides = [1, 1]} : vector<2x128xf32> to vector<2x32xf32>
    %27 = vector.extract_strided_slice %23 {offsets = [0, 96], sizes = [2, 32], strides = [1, 1]} : vector<2x128xf32> to vector<2x32xf32>
    %28 = vector.shape_cast %24 : vector<2x32xf32> to vector<2x1x32xf32>
    %c0_27 = arith.constant 0 : index
    %c0_28 = arith.constant 0 : index
    %c0_29 = arith.constant 0 : index
    %29 = vector.load %arg17[%c0_27, %c0_28, %c0_29] : memref<2x8x32xf32, #tpu.memory_space<vmem>>, vector<2x8x32xf32>
    %30 = vector.broadcast %28 : vector<2x1x32xf32> to vector<2x8x32xf32>
    %31 = arith.addf %30, %29 : vector<2x8x32xf32>
    %32 = math.tanh %31 : vector<2x8x32xf32>
    %33 = vector.shape_cast %32 : vector<2x8x32xf32> to vector<16x32xf32>
    %c0_30 = arith.constant 0 : index
    %c0_31 = arith.constant 0 : index
    %34 = vector.load %arg8[%c0_30, %c0_31] : memref<32x1xf32, #tpu.memory_space<vmem>>, vector<32x1xf32>
    %cst_32 = arith.constant dense<0.000000e+00> : vector<16x1xf32>
    %35 = tpu.matmul %33, %34, %cst_32 {dimension_numbers = #tpu.dot_dimension_numbers<[1], [0], [0], [1], [0, 0, 1, 1], [], []>} : vector<16x32xf32>, vector<32x1xf32>, vector<16x1xf32> -> vector<16x1xf32>
    %c0_33 = arith.constant 0 : index
    %c0_34 = arith.constant 0 : index
    %36 = vector.load %arg9[%c0_33, %c0_34] : memref<1x1xf32, #tpu.memory_space<vmem>>, vector<1x1xf32>
    %37 = vector.broadcast %36 : vector<1x1xf32> to vector<16x1xf32>
    %38 = arith.addf %35, %37 : vector<16x1xf32>
    %39 = vector.shape_cast %38 : vector<16x1xf32> to vector<2x8x1xf32>
    %cst_35 = arith.constant dense<0xFF800000> : vector<2x1xf32>
    %40 = vector.multi_reduction <maximumf>, %39, %cst_35 [1] : vector<2x8x1xf32> to vector<2x1xf32>
    %41 = vector.shape_cast %40 : vector<2x1xf32> to vector<2x1x1xf32>
    %42 = vector.broadcast %41 : vector<2x1x1xf32> to vector<2x8x1xf32>
    %43 = arith.subf %39, %42 : vector<2x8x1xf32>
    %44 = math.exp %43 : vector<2x8x1xf32>
    %cst_36 = arith.constant dense<0.000000e+00> : vector<2x1xf32>
    %45 = vector.multi_reduction <add>, %44, %cst_36 [1] : vector<2x8x1xf32> to vector<2x1xf32>
    %46 = vector.shape_cast %45 : vector<2x1xf32> to vector<2x1x1xf32>
    %47 = tpu.reciprocal %46 {approx = true} : vector<2x1x1xf32> -> vector<2x1x1xf32>
    %48 = vector.broadcast %47 : vector<2x1x1xf32> to vector<2x8x1xf32>
    %49 = arith.mulf %44, %48 : vector<2x8x1xf32>
    %c0_37 = arith.constant 0 : index
    %c0_38 = arith.constant 0 : index
    %c0_39 = arith.constant 0 : index
    %50 = vector.load %arg1[%c0_37, %c0_38, %c0_39] : memref<2x8x32xf32, #tpu.memory_space<vmem>>, vector<2x8x32xf32>
    %51 = vector.broadcast %49 : vector<2x8x1xf32> to vector<2x8x32xf32>
    %52 = arith.mulf %51, %50 : vector<2x8x32xf32>
    %cst_40 = arith.constant dense<0.000000e+00> : vector<2x32xf32>
    %53 = vector.multi_reduction <add>, %52, %cst_40 [1] : vector<2x8x32xf32> to vector<2x32xf32>
    %54 = tpu.concatenate %18, %53 in 1 : vector<2x64xf32>, vector<2x32xf32> -> vector<2x96xf32>
    %c0_41 = arith.constant 0 : index
    %c0_42 = arith.constant 0 : index
    %55 = vector.load %arg10[%c0_41, %c0_42] : memref<96x96xf32, #tpu.memory_space<vmem>>, vector<96x96xf32>
    %cst_43 = arith.constant dense<0.000000e+00> : vector<2x96xf32>
    %56 = tpu.matmul %54, %55, %cst_43 {dimension_numbers = #tpu.dot_dimension_numbers<[1], [0], [0], [1], [0, 0, 1, 1], [], []>} : vector<2x96xf32>, vector<96x96xf32>, vector<2x96xf32> -> vector<2x96xf32>
    %c0_44 = arith.constant 0 : index
    %c0_45 = arith.constant 0 : index
    %57 = vector.load %arg11[%c0_44, %c0_45] : memref<1x96xf32, #tpu.memory_space<vmem>>, vector<1x96xf32>
    %58 = vector.broadcast %57 : vector<1x96xf32> to vector<2x96xf32>
    %59 = arith.addf %56, %58 : vector<2x96xf32>
    %60 = vector.extract_strided_slice %59 {offsets = [0, 0], sizes = [2, 32], strides = [1, 1]} : vector<2x96xf32> to vector<2x32xf32>
    %61 = arith.addf %60, %25 : vector<2x32xf32>
    %62 = arith.negf %61 : vector<2x32xf32>
    %63 = math.exp %62 : vector<2x32xf32>
    %cst_46 = arith.constant 1.000000e+00 : f32
    %64 = vector.broadcast %cst_46 : f32 to vector<2x32xf32>
    %65 = arith.addf %64, %63 : vector<2x32xf32>
    %66 = arith.divf %64, %65 : vector<2x32xf32>
    %67 = vector.extract_strided_slice %59 {offsets = [0, 32], sizes = [2, 32], strides = [1, 1]} : vector<2x96xf32> to vector<2x32xf32>
    %68 = arith.addf %67, %26 : vector<2x32xf32>
    %69 = arith.negf %68 : vector<2x32xf32>
    %70 = math.exp %69 : vector<2x32xf32>
    %cst_47 = arith.constant 1.000000e+00 : f32
    %71 = vector.broadcast %cst_47 : f32 to vector<2x32xf32>
    %72 = arith.addf %71, %70 : vector<2x32xf32>
    %73 = arith.divf %71, %72 : vector<2x32xf32>
    %74 = vector.extract_strided_slice %59 {offsets = [0, 64], sizes = [2, 32], strides = [1, 1]} : vector<2x96xf32> to vector<2x32xf32>
    %75 = arith.mulf %66, %27 : vector<2x32xf32>
    %76 = arith.addf %74, %75 : vector<2x32xf32>
    %77 = math.tanh %76 : vector<2x32xf32>
    %cst_48 = arith.constant 1.000000e+00 : f32
    %78 = vector.broadcast %cst_48 : f32 to vector<2x32xf32>
    %79 = arith.subf %78, %73 : vector<2x32xf32>
    %80 = arith.mulf %79, %77 : vector<2x32xf32>
    %81 = arith.mulf %73, %17 : vector<2x32xf32>
    %82 = arith.addf %80, %81 : vector<2x32xf32>
    %c0_49 = arith.constant 0 : index
    %c0_50 = arith.constant 0 : index
    %83 = vector.load %arg15[%c0_49, %c0_50] : memref<2x32xf32, #tpu.memory_space<vmem>>, vector<2x32xf32>
    tpu.vector_store %arg15[%c0_49, %c0_50], %82 {strides = array<i32>} : memref<2x32xf32, #tpu.memory_space<vmem>>, vector<2x32xf32>,
    %c0_51 = arith.constant 0 : index
    %c0_52 = arith.constant 0 : index
    %84 = vector.load %arg12[%c0_51, %c0_52] : memref<32x128xf32, #tpu.memory_space<vmem>>, vector<32x128xf32>
    %cst_53 = arith.constant dense<0.000000e+00> : vector<2x128xf32>
    %85 = tpu.matmul %82, %84, %cst_53 {dimension_numbers = #tpu.dot_dimension_numbers<[1], [0], [0], [1], [0, 0, 1, 1], [], []>} : vector<2x32xf32>, vector<32x128xf32>, vector<2x128xf32> -> vector<2x128xf32>
    %c0_54 = arith.constant 0 : index
    %c0_55 = arith.constant 0 : index
    %86 = vector.load %arg13[%c0_54, %c0_55] : memref<1x128xf32, #tpu.memory_space<vmem>>, vector<1x128xf32>
    %87 = vector.broadcast %86 : vector<1x128xf32> to vector<2x128xf32>
    %88 = arith.addf %85, %87 : vector<2x128xf32>
    %cst_56 = arith.constant dense<0xFF800000> : vector<2xf32>
    %89 = vector.multi_reduction <maximumf>, %88, %cst_56 [1] : vector<2x128xf32> to vector<2xf32>
    %90 = vector.shape_cast %89 : vector<2xf32> to vector<2x1xf32>
    %91 = vector.broadcast %90 : vector<2x1xf32> to vector<2x128xf32>
    %92 = arith.subf %88, %91 : vector<2x128xf32>
    %93 = math.exp %92 : vector<2x128xf32>
    %cst_57 = arith.constant dense<0.000000e+00> : vector<2xf32>
    %94 = vector.multi_reduction <add>, %93, %cst_57 [1] : vector<2x128xf32> to vector<2xf32>
    %95 = vector.shape_cast %94 : vector<2xf32> to vector<2x1xf32>
    %96 = math.log %95 : vector<2x1xf32>
    %97 = arith.addf %96, %90 : vector<2x1xf32>
    %98 = vector.broadcast %97 : vector<2x1xf32> to vector<2x128xf32>
    %99 = arith.subf %88, %98 : vector<2x128xf32>
    %100 = vector.shape_cast %99 : vector<2x128xf32> to vector<2x1x128xf32>
    %c0_58 = arith.constant 0 : index
    %c0_59 = arith.constant 0 : index
    %c0_60 = arith.constant 0 : index
    %101 = vector.load %arg14[%c0_58, %c0_59, %c0_60] : memref<2x4x128xf32, #tpu.memory_space<vmem>>, vector<2x1x128xf32>
    tpu.vector_store %arg14[%c0_58, %c0_59, %c0_60], %100 {strides = array<i32>} : memref<2x4x128xf32, #tpu.memory_space<vmem>>, vector<2x1x128xf32>,
    %102 = tpu.iota {dimensions = array<i32: 1>} : vector<2x128xi32>
    %103 = vector.broadcast %90 : vector<2x1xf32> to vector<2x128xf32>
    %104 = arith.cmpf oeq, %88, %103 : vector<2x128xf32>
    %c128_i32 = arith.constant 128 : i32
    %105 = vector.broadcast %c128_i32 : i32 to vector<2x128xi32>
    %106 = arith.select %104, %102, %105 : vector<2x128xi1>, vector<2x128xi32>
    %cst_61 = arith.constant dense<2147483647> : vector<2xi32>
    %107 = vector.multi_reduction <minsi>, %106, %cst_61 [1] : vector<2x128xi32> to vector<2xi32>
    %108 = vector.shape_cast %107 : vector<2xi32> to vector<2x1xi32>
    %109 = vector.broadcast %108 : vector<2x1xi32> to vector<2x128xi32>
    %110 = arith.cmpi eq, %102, %109 : vector<2x128xi32>
    %111 = arith.extui %110 : vector<2x128xi1> to vector<2x128xi32>
    %112 = arith.sitofp %111 : vector<2x128xi32> to vector<2x128xf32>
    %c0_62 = arith.constant 0 : index
    %c0_63 = arith.constant 0 : index
    %113 = vector.load %arg3[%c0_62, %c0_63] : memref<128x64xf32, #tpu.memory_space<vmem>>, vector<128x64xf32>
    %cst_64 = arith.constant dense<0.000000e+00> : vector<2x64xf32>
    %114 = tpu.matmul %112, %113, %cst_64 {dimension_numbers = #tpu.dot_dimension_numbers<[1], [0], [0], [1], [0, 0, 1, 1], [], []>} : vector<2x128xf32>, vector<128x64xf32>, vector<2x64xf32> -> vector<2x64xf32>
    %c0_65 = arith.constant 0 : index
    %c0_66 = arith.constant 0 : index
    %115 = vector.load %arg16[%c0_65, %c0_66] : memref<2x64xf32, #tpu.memory_space<vmem>>, vector<2x64xf32>
    tpu.vector_store %arg16[%c0_65, %c0_66], %114 {strides = array<i32>} : memref<2x64xf32, #tpu.memory_space<vmem>>, vector<2x64xf32>,
    %c0_67 = arith.constant 0 : index
    %c0_68 = arith.constant 0 : index
    %116 = vector.load %arg15[%c0_67, %c0_68] : memref<2x32xf32, #tpu.memory_space<vmem>>, vector<2x32xf32>
    %c0_69 = arith.constant 0 : index
    %c0_70 = arith.constant 0 : index
    %117 = vector.load %arg16[%c0_69, %c0_70] : memref<2x64xf32, #tpu.memory_space<vmem>>, vector<2x64xf32>
    %c0_71 = arith.constant 0 : index
    %c0_72 = arith.constant 0 : index
    %118 = vector.load %arg6[%c0_71, %c0_72] : memref<32x128xf32, #tpu.memory_space<vmem>>, vector<32x128xf32>
    %cst_73 = arith.constant dense<0.000000e+00> : vector<2x128xf32>
    %119 = tpu.matmul %116, %118, %cst_73 {dimension_numbers = #tpu.dot_dimension_numbers<[1], [0], [0], [1], [0, 0, 1, 1], [], []>} : vector<2x32xf32>, vector<32x128xf32>, vector<2x128xf32> -> vector<2x128xf32>
    %c0_74 = arith.constant 0 : index
    %c0_75 = arith.constant 0 : index
    %120 = vector.load %arg7[%c0_74, %c0_75] : memref<1x128xf32, #tpu.memory_space<vmem>>, vector<1x128xf32>
    %121 = vector.broadcast %120 : vector<1x128xf32> to vector<2x128xf32>
    %122 = arith.addf %119, %121 : vector<2x128xf32>
    %123 = vector.extract_strided_slice %122 {offsets = [0, 0], sizes = [2, 32], strides = [1, 1]} : vector<2x128xf32> to vector<2x32xf32>
    %124 = vector.extract_strided_slice %122 {offsets = [0, 32], sizes = [2, 32], strides = [1, 1]} : vector<2x128xf32> to vector<2x32xf32>
    %125 = vector.extract_strided_slice %122 {offsets = [0, 64], sizes = [2, 32], strides = [1, 1]} : vector<2x128xf32> to vector<2x32xf32>
    %126 = vector.extract_strided_slice %122 {offsets = [0, 96], sizes = [2, 32], strides = [1, 1]} : vector<2x128xf32> to vector<2x32xf32>
    %127 = vector.shape_cast %123 : vector<2x32xf32> to vector<2x1x32xf32>
    %c0_76 = arith.constant 0 : index
    %c0_77 = arith.constant 0 : index
    %c0_78 = arith.constant 0 : index
    %128 = vector.load %arg17[%c0_76, %c0_77, %c0_78] : memref<2x8x32xf32, #tpu.memory_space<vmem>>, vector<2x8x32xf32>
    %129 = vector.broadcast %127 : vector<2x1x32xf32> to vector<2x8x32xf32>
    %130 = arith.addf %129, %128 : vector<2x8x32xf32>
    %131 = math.tanh %130 : vector<2x8x32xf32>
    %132 = vector.shape_cast %131 : vector<2x8x32xf32> to vector<16x32xf32>
    %c0_79 = arith.constant 0 : index
    %c0_80 = arith.constant 0 : index
    %133 = vector.load %arg8[%c0_79, %c0_80] : memref<32x1xf32, #tpu.memory_space<vmem>>, vector<32x1xf32>
    %cst_81 = arith.constant dense<0.000000e+00> : vector<16x1xf32>
    %134 = tpu.matmul %132, %133, %cst_81 {dimension_numbers = #tpu.dot_dimension_numbers<[1], [0], [0], [1], [0, 0, 1, 1], [], []>} : vector<16x32xf32>, vector<32x1xf32>, vector<16x1xf32> -> vector<16x1xf32>
    %c0_82 = arith.constant 0 : index
    %c0_83 = arith.constant 0 : index
    %135 = vector.load %arg9[%c0_82, %c0_83] : memref<1x1xf32, #tpu.memory_space<vmem>>, vector<1x1xf32>
    %136 = vector.broadcast %135 : vector<1x1xf32> to vector<16x1xf32>
    %137 = arith.addf %134, %136 : vector<16x1xf32>
    %138 = vector.shape_cast %137 : vector<16x1xf32> to vector<2x8x1xf32>
    %cst_84 = arith.constant dense<0xFF800000> : vector<2x1xf32>
    %139 = vector.multi_reduction <maximumf>, %138, %cst_84 [1] : vector<2x8x1xf32> to vector<2x1xf32>
    %140 = vector.shape_cast %139 : vector<2x1xf32> to vector<2x1x1xf32>
    %141 = vector.broadcast %140 : vector<2x1x1xf32> to vector<2x8x1xf32>
    %142 = arith.subf %138, %141 : vector<2x8x1xf32>
    %143 = math.exp %142 : vector<2x8x1xf32>
    %cst_85 = arith.constant dense<0.000000e+00> : vector<2x1xf32>
    %144 = vector.multi_reduction <add>, %143, %cst_85 [1] : vector<2x8x1xf32> to vector<2x1xf32>
    %145 = vector.shape_cast %144 : vector<2x1xf32> to vector<2x1x1xf32>
    %146 = tpu.reciprocal %145 {approx = true} : vector<2x1x1xf32> -> vector<2x1x1xf32>
    %147 = vector.broadcast %146 : vector<2x1x1xf32> to vector<2x8x1xf32>
    %148 = arith.mulf %143, %147 : vector<2x8x1xf32>
    %c0_86 = arith.constant 0 : index
    %c0_87 = arith.constant 0 : index
    %c0_88 = arith.constant 0 : index
    %149 = vector.load %arg1[%c0_86, %c0_87, %c0_88] : memref<2x8x32xf32, #tpu.memory_space<vmem>>, vector<2x8x32xf32>
    %150 = vector.broadcast %148 : vector<2x8x1xf32> to vector<2x8x32xf32>
    %151 = arith.mulf %150, %149 : vector<2x8x32xf32>
    %cst_89 = arith.constant dense<0.000000e+00> : vector<2x32xf32>
    %152 = vector.multi_reduction <add>, %151, %cst_89 [1] : vector<2x8x32xf32> to vector<2x32xf32>
    %153 = tpu.concatenate %117, %152 in 1 : vector<2x64xf32>, vector<2x32xf32> -> vector<2x96xf32>
    %c0_90 = arith.constant 0 : index
    %c0_91 = arith.constant 0 : index
    %154 = vector.load %arg10[%c0_90, %c0_91] : memref<96x96xf32, #tpu.memory_space<vmem>>, vector<96x96xf32>
    %cst_92 = arith.constant dense<0.000000e+00> : vector<2x96xf32>
    %155 = tpu.matmul %153, %154, %cst_92 {dimension_numbers = #tpu.dot_dimension_numbers<[1], [0], [0], [1], [0, 0, 1, 1], [], []>} : vector<2x96xf32>, vector<96x96xf32>, vector<2x96xf32> -> vector<2x96xf32>
    %c0_93 = arith.constant 0 : index
    %c0_94 = arith.constant 0 : index
    %156 = vector.load %arg11[%c0_93, %c0_94] : memref<1x96xf32, #tpu.memory_space<vmem>>, vector<1x96xf32>
    %157 = vector.broadcast %156 : vector<1x96xf32> to vector<2x96xf32>
    %158 = arith.addf %155, %157 : vector<2x96xf32>
    %159 = vector.extract_strided_slice %158 {offsets = [0, 0], sizes = [2, 32], strides = [1, 1]} : vector<2x96xf32> to vector<2x32xf32>
    %160 = arith.addf %159, %124 : vector<2x32xf32>
    %161 = arith.negf %160 : vector<2x32xf32>
    %162 = math.exp %161 : vector<2x32xf32>
    %cst_95 = arith.constant 1.000000e+00 : f32
    %163 = vector.broadcast %cst_95 : f32 to vector<2x32xf32>
    %164 = arith.addf %163, %162 : vector<2x32xf32>
    %165 = arith.divf %163, %164 : vector<2x32xf32>
    %166 = vector.extract_strided_slice %158 {offsets = [0, 32], sizes = [2, 32], strides = [1, 1]} : vector<2x96xf32> to vector<2x32xf32>
    %167 = arith.addf %166, %125 : vector<2x32xf32>
    %168 = arith.negf %167 : vector<2x32xf32>
    %169 = math.exp %168 : vector<2x32xf32>
    %cst_96 = arith.constant 1.000000e+00 : f32
    %170 = vector.broadcast %cst_96 : f32 to vector<2x32xf32>
    %171 = arith.addf %170, %169 : vector<2x32xf32>
    %172 = arith.divf %170, %171 : vector<2x32xf32>
    %173 = vector.extract_strided_slice %158 {offsets = [0, 64], sizes = [2, 32], strides = [1, 1]} : vector<2x96xf32> to vector<2x32xf32>
    %174 = arith.mulf %165, %126 : vector<2x32xf32>
    %175 = arith.addf %173, %174 : vector<2x32xf32>
    %176 = math.tanh %175 : vector<2x32xf32>
    %cst_97 = arith.constant 1.000000e+00 : f32
    %177 = vector.broadcast %cst_97 : f32 to vector<2x32xf32>
    %178 = arith.subf %177, %172 : vector<2x32xf32>
    %179 = arith.mulf %178, %176 : vector<2x32xf32>
    %180 = arith.mulf %172, %116 : vector<2x32xf32>
    %181 = arith.addf %179, %180 : vector<2x32xf32>
    %c0_98 = arith.constant 0 : index
    %c0_99 = arith.constant 0 : index
    %182 = vector.load %arg15[%c0_98, %c0_99] : memref<2x32xf32, #tpu.memory_space<vmem>>, vector<2x32xf32>
    tpu.vector_store %arg15[%c0_98, %c0_99], %181 {strides = array<i32>} : memref<2x32xf32, #tpu.memory_space<vmem>>, vector<2x32xf32>,
    %c0_100 = arith.constant 0 : index
    %c0_101 = arith.constant 0 : index
    %183 = vector.load %arg12[%c0_100, %c0_101] : memref<32x128xf32, #tpu.memory_space<vmem>>, vector<32x128xf32>
    %cst_102 = arith.constant dense<0.000000e+00> : vector<2x128xf32>
    %184 = tpu.matmul %181, %183, %cst_102 {dimension_numbers = #tpu.dot_dimension_numbers<[1], [0], [0], [1], [0, 0, 1, 1], [], []>} : vector<2x32xf32>, vector<32x128xf32>, vector<2x128xf32> -> vector<2x128xf32>
    %c0_103 = arith.constant 0 : index
    %c0_104 = arith.constant 0 : index
    %185 = vector.load %arg13[%c0_103, %c0_104] : memref<1x128xf32, #tpu.memory_space<vmem>>, vector<1x128xf32>
    %186 = vector.broadcast %185 : vector<1x128xf32> to vector<2x128xf32>
    %187 = arith.addf %184, %186 : vector<2x128xf32>
    %cst_105 = arith.constant dense<0xFF800000> : vector<2xf32>
    %188 = vector.multi_reduction <maximumf>, %187, %cst_105 [1] : vector<2x128xf32> to vector<2xf32>
    %189 = vector.shape_cast %188 : vector<2xf32> to vector<2x1xf32>
    %190 = vector.broadcast %189 : vector<2x1xf32> to vector<2x128xf32>
    %191 = arith.subf %187, %190 : vector<2x128xf32>
    %192 = math.exp %191 : vector<2x128xf32>
    %cst_106 = arith.constant dense<0.000000e+00> : vector<2xf32>
    %193 = vector.multi_reduction <add>, %192, %cst_106 [1] : vector<2x128xf32> to vector<2xf32>
    %194 = vector.shape_cast %193 : vector<2xf32> to vector<2x1xf32>
    %195 = math.log %194 : vector<2x1xf32>
    %196 = arith.addf %195, %189 : vector<2x1xf32>
    %197 = vector.broadcast %196 : vector<2x1xf32> to vector<2x128xf32>
    %198 = arith.subf %187, %197 : vector<2x128xf32>
    %199 = vector.shape_cast %198 : vector<2x128xf32> to vector<2x1x128xf32>
    %c0_107 = arith.constant 0 : index
    %c1 = arith.constant 1 : index
    %c0_108 = arith.constant 0 : index
    %200 = vector.load %arg14[%c0_107, %c1, %c0_108] : memref<2x4x128xf32, #tpu.memory_space<vmem>>, vector<2x1x128xf32>
    tpu.vector_store %arg14[%c0_107, %c1, %c0_108], %199 {strides = array<i32>} : memref<2x4x128xf32, #tpu.memory_space<vmem>>, vector<2x1x128xf32>,
    %201 = tpu.iota {dimensions = array<i32: 1>} : vector<2x128xi32>
    %202 = vector.broadcast %189 : vector<2x1xf32> to vector<2x128xf32>
    %203 = arith.cmpf oeq, %187, %202 : vector<2x128xf32>
    %c128_i32_109 = arith.constant 128 : i32
    %204 = vector.broadcast %c128_i32_109 : i32 to vector<2x128xi32>
    %205 = arith.select %203, %201, %204 : vector<2x128xi1>, vector<2x128xi32>
    %cst_110 = arith.constant dense<2147483647> : vector<2xi32>
    %206 = vector.multi_reduction <minsi>, %205, %cst_110 [1] : vector<2x128xi32> to vector<2xi32>
    %207 = vector.shape_cast %206 : vector<2xi32> to vector<2x1xi32>
    %208 = vector.broadcast %207 : vector<2x1xi32> to vector<2x128xi32>
    %209 = arith.cmpi eq, %201, %208 : vector<2x128xi32>
    %210 = arith.extui %209 : vector<2x128xi1> to vector<2x128xi32>
    %211 = arith.sitofp %210 : vector<2x128xi32> to vector<2x128xf32>
    %c0_111 = arith.constant 0 : index
    %c0_112 = arith.constant 0 : index
    %212 = vector.load %arg3[%c0_111, %c0_112] : memref<128x64xf32, #tpu.memory_space<vmem>>, vector<128x64xf32>
    %cst_113 = arith.constant dense<0.000000e+00> : vector<2x64xf32>
    %213 = tpu.matmul %211, %212, %cst_113 {dimension_numbers = #tpu.dot_dimension_numbers<[1], [0], [0], [1], [0, 0, 1, 1], [], []>} : vector<2x128xf32>, vector<128x64xf32>, vector<2x64xf32> -> vector<2x64xf32>
    %c0_114 = arith.constant 0 : index
    %c0_115 = arith.constant 0 : index
    %214 = vector.load %arg16[%c0_114, %c0_115] : memref<2x64xf32, #tpu.memory_space<vmem>>, vector<2x64xf32>
    tpu.vector_store %arg16[%c0_114, %c0_115], %213 {strides = array<i32>} : memref<2x64xf32, #tpu.memory_space<vmem>>, vector<2x64xf32>,
    %c0_116 = arith.constant 0 : index
    %c0_117 = arith.constant 0 : index
    %215 = vector.load %arg15[%c0_116, %c0_117] : memref<2x32xf32, #tpu.memory_space<vmem>>, vector<2x32xf32>
    %c0_118 = arith.constant 0 : index
    %c0_119 = arith.constant 0 : index
    %216 = vector.load %arg16[%c0_118, %c0_119] : memref<2x64xf32, #tpu.memory_space<vmem>>, vector<2x64xf32>
    %c0_120 = arith.constant 0 : index
    %c0_121 = arith.constant 0 : index
    %217 = vector.load %arg6[%c0_120, %c0_121] : memref<32x128xf32, #tpu.memory_space<vmem>>, vector<32x128xf32>
    %cst_122 = arith.constant dense<0.000000e+00> : vector<2x128xf32>
    %218 = tpu.matmul %215, %217, %cst_122 {dimension_numbers = #tpu.dot_dimension_numbers<[1], [0], [0], [1], [0, 0, 1, 1], [], []>} : vector<2x32xf32>, vector<32x128xf32>, vector<2x128xf32> -> vector<2x128xf32>
    %c0_123 = arith.constant 0 : index
    %c0_124 = arith.constant 0 : index
    %219 = vector.load %arg7[%c0_123, %c0_124] : memref<1x128xf32, #tpu.memory_space<vmem>>, vector<1x128xf32>
    %220 = vector.broadcast %219 : vector<1x128xf32> to vector<2x128xf32>
    %221 = arith.addf %218, %220 : vector<2x128xf32>
    %222 = vector.extract_strided_slice %221 {offsets = [0, 0], sizes = [2, 32], strides = [1, 1]} : vector<2x128xf32> to vector<2x32xf32>
    %223 = vector.extract_strided_slice %221 {offsets = [0, 32], sizes = [2, 32], strides = [1, 1]} : vector<2x128xf32> to vector<2x32xf32>
    %224 = vector.extract_strided_slice %221 {offsets = [0, 64], sizes = [2, 32], strides = [1, 1]} : vector<2x128xf32> to vector<2x32xf32>
    %225 = vector.extract_strided_slice %221 {offsets = [0, 96], sizes = [2, 32], strides = [1, 1]} : vector<2x128xf32> to vector<2x32xf32>
    %226 = vector.shape_cast %222 : vector<2x32xf32> to vector<2x1x32xf32>
    %c0_125 = arith.constant 0 : index
    %c0_126 = arith.constant 0 : index
    %c0_127 = arith.constant 0 : index
    %227 = vector.load %arg17[%c0_125, %c0_126, %c0_127] : memref<2x8x32xf32, #tpu.memory_space<vmem>>, vector<2x8x32xf32>
    %228 = vector.broadcast %226 : vector<2x1x32xf32> to vector<2x8x32xf32>
    %229 = arith.addf %228, %227 : vector<2x8x32xf32>
    %230 = math.tanh %229 : vector<2x8x32xf32>
    %231 = vector.shape_cast %230 : vector<2x8x32xf32> to vector<16x32xf32>
    %c0_128 = arith.constant 0 : index
    %c0_129 = arith.constant 0 : index
    %232 = vector.load %arg8[%c0_128, %c0_129] : memref<32x1xf32, #tpu.memory_space<vmem>>, vector<32x1xf32>
    %cst_130 = arith.constant dense<0.000000e+00> : vector<16x1xf32>
    %233 = tpu.matmul %231, %232, %cst_130 {dimension_numbers = #tpu.dot_dimension_numbers<[1], [0], [0], [1], [0, 0, 1, 1], [], []>} : vector<16x32xf32>, vector<32x1xf32>, vector<16x1xf32> -> vector<16x1xf32>
    %c0_131 = arith.constant 0 : index
    %c0_132 = arith.constant 0 : index
    %234 = vector.load %arg9[%c0_131, %c0_132] : memref<1x1xf32, #tpu.memory_space<vmem>>, vector<1x1xf32>
    %235 = vector.broadcast %234 : vector<1x1xf32> to vector<16x1xf32>
    %236 = arith.addf %233, %235 : vector<16x1xf32>
    %237 = vector.shape_cast %236 : vector<16x1xf32> to vector<2x8x1xf32>
    %cst_133 = arith.constant dense<0xFF800000> : vector<2x1xf32>
    %238 = vector.multi_reduction <maximumf>, %237, %cst_133 [1] : vector<2x8x1xf32> to vector<2x1xf32>
    %239 = vector.shape_cast %238 : vector<2x1xf32> to vector<2x1x1xf32>
    %240 = vector.broadcast %239 : vector<2x1x1xf32> to vector<2x8x1xf32>
    %241 = arith.subf %237, %240 : vector<2x8x1xf32>
    %242 = math.exp %241 : vector<2x8x1xf32>
    %cst_134 = arith.constant dense<0.000000e+00> : vector<2x1xf32>
    %243 = vector.multi_reduction <add>, %242, %cst_134 [1] : vector<2x8x1xf32> to vector<2x1xf32>
    %244 = vector.shape_cast %243 : vector<2x1xf32> to vector<2x1x1xf32>
    %245 = tpu.reciprocal %244 {approx = true} : vector<2x1x1xf32> -> vector<2x1x1xf32>
    %246 = vector.broadcast %245 : vector<2x1x1xf32> to vector<2x8x1xf32>
    %247 = arith.mulf %242, %246 : vector<2x8x1xf32>
    %c0_135 = arith.constant 0 : index
    %c0_136 = arith.constant 0 : index
    %c0_137 = arith.constant 0 : index
    %248 = vector.load %arg1[%c0_135, %c0_136, %c0_137] : memref<2x8x32xf32, #tpu.memory_space<vmem>>, vector<2x8x32xf32>
    %249 = vector.broadcast %247 : vector<2x8x1xf32> to vector<2x8x32xf32>
    %250 = arith.mulf %249, %248 : vector<2x8x32xf32>
    %cst_138 = arith.constant dense<0.000000e+00> : vector<2x32xf32>
    %251 = vector.multi_reduction <add>, %250, %cst_138 [1] : vector<2x8x32xf32> to vector<2x32xf32>
    %252 = tpu.concatenate %216, %251 in 1 : vector<2x64xf32>, vector<2x32xf32> -> vector<2x96xf32>
    %c0_139 = arith.constant 0 : index
    %c0_140 = arith.constant 0 : index
    %253 = vector.load %arg10[%c0_139, %c0_140] : memref<96x96xf32, #tpu.memory_space<vmem>>, vector<96x96xf32>
    %cst_141 = arith.constant dense<0.000000e+00> : vector<2x96xf32>
    %254 = tpu.matmul %252, %253, %cst_141 {dimension_numbers = #tpu.dot_dimension_numbers<[1], [0], [0], [1], [0, 0, 1, 1], [], []>} : vector<2x96xf32>, vector<96x96xf32>, vector<2x96xf32> -> vector<2x96xf32>
    %c0_142 = arith.constant 0 : index
    %c0_143 = arith.constant 0 : index
    %255 = vector.load %arg11[%c0_142, %c0_143] : memref<1x96xf32, #tpu.memory_space<vmem>>, vector<1x96xf32>
    %256 = vector.broadcast %255 : vector<1x96xf32> to vector<2x96xf32>
    %257 = arith.addf %254, %256 : vector<2x96xf32>
    %258 = vector.extract_strided_slice %257 {offsets = [0, 0], sizes = [2, 32], strides = [1, 1]} : vector<2x96xf32> to vector<2x32xf32>
    %259 = arith.addf %258, %223 : vector<2x32xf32>
    %260 = arith.negf %259 : vector<2x32xf32>
    %261 = math.exp %260 : vector<2x32xf32>
    %cst_144 = arith.constant 1.000000e+00 : f32
    %262 = vector.broadcast %cst_144 : f32 to vector<2x32xf32>
    %263 = arith.addf %262, %261 : vector<2x32xf32>
    %264 = arith.divf %262, %263 : vector<2x32xf32>
    %265 = vector.extract_strided_slice %257 {offsets = [0, 32], sizes = [2, 32], strides = [1, 1]} : vector<2x96xf32> to vector<2x32xf32>
    %266 = arith.addf %265, %224 : vector<2x32xf32>
    %267 = arith.negf %266 : vector<2x32xf32>
    %268 = math.exp %267 : vector<2x32xf32>
    %cst_145 = arith.constant 1.000000e+00 : f32
    %269 = vector.broadcast %cst_145 : f32 to vector<2x32xf32>
    %270 = arith.addf %269, %268 : vector<2x32xf32>
    %271 = arith.divf %269, %270 : vector<2x32xf32>
    %272 = vector.extract_strided_slice %257 {offsets = [0, 64], sizes = [2, 32], strides = [1, 1]} : vector<2x96xf32> to vector<2x32xf32>
    %273 = arith.mulf %264, %225 : vector<2x32xf32>
    %274 = arith.addf %272, %273 : vector<2x32xf32>
    %275 = math.tanh %274 : vector<2x32xf32>
    %cst_146 = arith.constant 1.000000e+00 : f32
    %276 = vector.broadcast %cst_146 : f32 to vector<2x32xf32>
    %277 = arith.subf %276, %271 : vector<2x32xf32>
    %278 = arith.mulf %277, %275 : vector<2x32xf32>
    %279 = arith.mulf %271, %215 : vector<2x32xf32>
    %280 = arith.addf %278, %279 : vector<2x32xf32>
    %c0_147 = arith.constant 0 : index
    %c0_148 = arith.constant 0 : index
    %281 = vector.load %arg15[%c0_147, %c0_148] : memref<2x32xf32, #tpu.memory_space<vmem>>, vector<2x32xf32>
    tpu.vector_store %arg15[%c0_147, %c0_148], %280 {strides = array<i32>} : memref<2x32xf32, #tpu.memory_space<vmem>>, vector<2x32xf32>,
    %c0_149 = arith.constant 0 : index
    %c0_150 = arith.constant 0 : index
    %282 = vector.load %arg12[%c0_149, %c0_150] : memref<32x128xf32, #tpu.memory_space<vmem>>, vector<32x128xf32>
    %cst_151 = arith.constant dense<0.000000e+00> : vector<2x128xf32>
    %283 = tpu.matmul %280, %282, %cst_151 {dimension_numbers = #tpu.dot_dimension_numbers<[1], [0], [0], [1], [0, 0, 1, 1], [], []>} : vector<2x32xf32>, vector<32x128xf32>, vector<2x128xf32> -> vector<2x128xf32>
    %c0_152 = arith.constant 0 : index
    %c0_153 = arith.constant 0 : index
    %284 = vector.load %arg13[%c0_152, %c0_153] : memref<1x128xf32, #tpu.memory_space<vmem>>, vector<1x128xf32>
    %285 = vector.broadcast %284 : vector<1x128xf32> to vector<2x128xf32>
    %286 = arith.addf %283, %285 : vector<2x128xf32>
    %cst_154 = arith.constant dense<0xFF800000> : vector<2xf32>
    %287 = vector.multi_reduction <maximumf>, %286, %cst_154 [1] : vector<2x128xf32> to vector<2xf32>
    %288 = vector.shape_cast %287 : vector<2xf32> to vector<2x1xf32>
    %289 = vector.broadcast %288 : vector<2x1xf32> to vector<2x128xf32>
    %290 = arith.subf %286, %289 : vector<2x128xf32>
    %291 = math.exp %290 : vector<2x128xf32>
    %cst_155 = arith.constant dense<0.000000e+00> : vector<2xf32>
    %292 = vector.multi_reduction <add>, %291, %cst_155 [1] : vector<2x128xf32> to vector<2xf32>
    %293 = vector.shape_cast %292 : vector<2xf32> to vector<2x1xf32>
    %294 = math.log %293 : vector<2x1xf32>
    %295 = arith.addf %294, %288 : vector<2x1xf32>
    %296 = vector.broadcast %295 : vector<2x1xf32> to vector<2x128xf32>
    %297 = arith.subf %286, %296 : vector<2x128xf32>
    %298 = vector.shape_cast %297 : vector<2x128xf32> to vector<2x1x128xf32>
    %c0_156 = arith.constant 0 : index
    %c2 = arith.constant 2 : index
    %c0_157 = arith.constant 0 : index
    %299 = vector.load %arg14[%c0_156, %c2, %c0_157] : memref<2x4x128xf32, #tpu.memory_space<vmem>>, vector<2x1x128xf32>
    tpu.vector_store %arg14[%c0_156, %c2, %c0_157], %298 {strides = array<i32>} : memref<2x4x128xf32, #tpu.memory_space<vmem>>, vector<2x1x128xf32>,
    %300 = tpu.iota {dimensions = array<i32: 1>} : vector<2x128xi32>
    %301 = vector.broadcast %288 : vector<2x1xf32> to vector<2x128xf32>
    %302 = arith.cmpf oeq, %286, %301 : vector<2x128xf32>
    %c128_i32_158 = arith.constant 128 : i32
    %303 = vector.broadcast %c128_i32_158 : i32 to vector<2x128xi32>
    %304 = arith.select %302, %300, %303 : vector<2x128xi1>, vector<2x128xi32>
    %cst_159 = arith.constant dense<2147483647> : vector<2xi32>
    %305 = vector.multi_reduction <minsi>, %304, %cst_159 [1] : vector<2x128xi32> to vector<2xi32>
    %306 = vector.shape_cast %305 : vector<2xi32> to vector<2x1xi32>
    %307 = vector.broadcast %306 : vector<2x1xi32> to vector<2x128xi32>
    %308 = arith.cmpi eq, %300, %307 : vector<2x128xi32>
    %309 = arith.extui %308 : vector<2x128xi1> to vector<2x128xi32>
    %310 = arith.sitofp %309 : vector<2x128xi32> to vector<2x128xf32>
    %c0_160 = arith.constant 0 : index
    %c0_161 = arith.constant 0 : index
    %311 = vector.load %arg3[%c0_160, %c0_161] : memref<128x64xf32, #tpu.memory_space<vmem>>, vector<128x64xf32>
    %cst_162 = arith.constant dense<0.000000e+00> : vector<2x64xf32>
    %312 = tpu.matmul %310, %311, %cst_162 {dimension_numbers = #tpu.dot_dimension_numbers<[1], [0], [0], [1], [0, 0, 1, 1], [], []>} : vector<2x128xf32>, vector<128x64xf32>, vector<2x64xf32> -> vector<2x64xf32>
    %c0_163 = arith.constant 0 : index
    %c0_164 = arith.constant 0 : index
    %313 = vector.load %arg16[%c0_163, %c0_164] : memref<2x64xf32, #tpu.memory_space<vmem>>, vector<2x64xf32>
    tpu.vector_store %arg16[%c0_163, %c0_164], %312 {strides = array<i32>} : memref<2x64xf32, #tpu.memory_space<vmem>>, vector<2x64xf32>,
    %c0_165 = arith.constant 0 : index
    %c0_166 = arith.constant 0 : index
    %314 = vector.load %arg15[%c0_165, %c0_166] : memref<2x32xf32, #tpu.memory_space<vmem>>, vector<2x32xf32>
    %c0_167 = arith.constant 0 : index
    %c0_168 = arith.constant 0 : index
    %315 = vector.load %arg16[%c0_167, %c0_168] : memref<2x64xf32, #tpu.memory_space<vmem>>, vector<2x64xf32>
    %c0_169 = arith.constant 0 : index
    %c0_170 = arith.constant 0 : index
    %316 = vector.load %arg6[%c0_169, %c0_170] : memref<32x128xf32, #tpu.memory_space<vmem>>, vector<32x128xf32>
    %cst_171 = arith.constant dense<0.000000e+00> : vector<2x128xf32>
    %317 = tpu.matmul %314, %316, %cst_171 {dimension_numbers = #tpu.dot_dimension_numbers<[1], [0], [0], [1], [0, 0, 1, 1], [], []>} : vector<2x32xf32>, vector<32x128xf32>, vector<2x128xf32> -> vector<2x128xf32>
    %c0_172 = arith.constant 0 : index
    %c0_173 = arith.constant 0 : index
    %318 = vector.load %arg7[%c0_172, %c0_173] : memref<1x128xf32, #tpu.memory_space<vmem>>, vector<1x128xf32>
    %319 = vector.broadcast %318 : vector<1x128xf32> to vector<2x128xf32>
    %320 = arith.addf %317, %319 : vector<2x128xf32>
    %321 = vector.extract_strided_slice %320 {offsets = [0, 0], sizes = [2, 32], strides = [1, 1]} : vector<2x128xf32> to vector<2x32xf32>
    %322 = vector.extract_strided_slice %320 {offsets = [0, 32], sizes = [2, 32], strides = [1, 1]} : vector<2x128xf32> to vector<2x32xf32>
    %323 = vector.extract_strided_slice %320 {offsets = [0, 64], sizes = [2, 32], strides = [1, 1]} : vector<2x128xf32> to vector<2x32xf32>
    %324 = vector.extract_strided_slice %320 {offsets = [0, 96], sizes = [2, 32], strides = [1, 1]} : vector<2x128xf32> to vector<2x32xf32>
    %325 = vector.shape_cast %321 : vector<2x32xf32> to vector<2x1x32xf32>
    %c0_174 = arith.constant 0 : index
    %c0_175 = arith.constant 0 : index
    %c0_176 = arith.constant 0 : index
    %326 = vector.load %arg17[%c0_174, %c0_175, %c0_176] : memref<2x8x32xf32, #tpu.memory_space<vmem>>, vector<2x8x32xf32>
    %327 = vector.broadcast %325 : vector<2x1x32xf32> to vector<2x8x32xf32>
    %328 = arith.addf %327, %326 : vector<2x8x32xf32>
    %329 = math.tanh %328 : vector<2x8x32xf32>
    %330 = vector.shape_cast %329 : vector<2x8x32xf32> to vector<16x32xf32>
    %c0_177 = arith.constant 0 : index
    %c0_178 = arith.constant 0 : index
    %331 = vector.load %arg8[%c0_177, %c0_178] : memref<32x1xf32, #tpu.memory_space<vmem>>, vector<32x1xf32>
    %cst_179 = arith.constant dense<0.000000e+00> : vector<16x1xf32>
    %332 = tpu.matmul %330, %331, %cst_179 {dimension_numbers = #tpu.dot_dimension_numbers<[1], [0], [0], [1], [0, 0, 1, 1], [], []>} : vector<16x32xf32>, vector<32x1xf32>, vector<16x1xf32> -> vector<16x1xf32>
    %c0_180 = arith.constant 0 : index
    %c0_181 = arith.constant 0 : index
    %333 = vector.load %arg9[%c0_180, %c0_181] : memref<1x1xf32, #tpu.memory_space<vmem>>, vector<1x1xf32>
    %334 = vector.broadcast %333 : vector<1x1xf32> to vector<16x1xf32>
    %335 = arith.addf %332, %334 : vector<16x1xf32>
    %336 = vector.shape_cast %335 : vector<16x1xf32> to vector<2x8x1xf32>
    %cst_182 = arith.constant dense<0xFF800000> : vector<2x1xf32>
    %337 = vector.multi_reduction <maximumf>, %336, %cst_182 [1] : vector<2x8x1xf32> to vector<2x1xf32>
    %338 = vector.shape_cast %337 : vector<2x1xf32> to vector<2x1x1xf32>
    %339 = vector.broadcast %338 : vector<2x1x1xf32> to vector<2x8x1xf32>
    %340 = arith.subf %336, %339 : vector<2x8x1xf32>
    %341 = math.exp %340 : vector<2x8x1xf32>
    %cst_183 = arith.constant dense<0.000000e+00> : vector<2x1xf32>
    %342 = vector.multi_reduction <add>, %341, %cst_183 [1] : vector<2x8x1xf32> to vector<2x1xf32>
    %343 = vector.shape_cast %342 : vector<2x1xf32> to vector<2x1x1xf32>
    %344 = tpu.reciprocal %343 {approx = true} : vector<2x1x1xf32> -> vector<2x1x1xf32>
    %345 = vector.broadcast %344 : vector<2x1x1xf32> to vector<2x8x1xf32>
    %346 = arith.mulf %341, %345 : vector<2x8x1xf32>
    %c0_184 = arith.constant 0 : index
    %c0_185 = arith.constant 0 : index
    %c0_186 = arith.constant 0 : index
    %347 = vector.load %arg1[%c0_184, %c0_185, %c0_186] : memref<2x8x32xf32, #tpu.memory_space<vmem>>, vector<2x8x32xf32>
    %348 = vector.broadcast %346 : vector<2x8x1xf32> to vector<2x8x32xf32>
    %349 = arith.mulf %348, %347 : vector<2x8x32xf32>
    %cst_187 = arith.constant dense<0.000000e+00> : vector<2x32xf32>
    %350 = vector.multi_reduction <add>, %349, %cst_187 [1] : vector<2x8x32xf32> to vector<2x32xf32>
    %351 = tpu.concatenate %315, %350 in 1 : vector<2x64xf32>, vector<2x32xf32> -> vector<2x96xf32>
    %c0_188 = arith.constant 0 : index
    %c0_189 = arith.constant 0 : index
    %352 = vector.load %arg10[%c0_188, %c0_189] : memref<96x96xf32, #tpu.memory_space<vmem>>, vector<96x96xf32>
    %cst_190 = arith.constant dense<0.000000e+00> : vector<2x96xf32>
    %353 = tpu.matmul %351, %352, %cst_190 {dimension_numbers = #tpu.dot_dimension_numbers<[1], [0], [0], [1], [0, 0, 1, 1], [], []>} : vector<2x96xf32>, vector<96x96xf32>, vector<2x96xf32> -> vector<2x96xf32>
    %c0_191 = arith.constant 0 : index
    %c0_192 = arith.constant 0 : index
    %354 = vector.load %arg11[%c0_191, %c0_192] : memref<1x96xf32, #tpu.memory_space<vmem>>, vector<1x96xf32>
    %355 = vector.broadcast %354 : vector<1x96xf32> to vector<2x96xf32>
    %356 = arith.addf %353, %355 : vector<2x96xf32>
    %357 = vector.extract_strided_slice %356 {offsets = [0, 0], sizes = [2, 32], strides = [1, 1]} : vector<2x96xf32> to vector<2x32xf32>
    %358 = arith.addf %357, %322 : vector<2x32xf32>
    %359 = arith.negf %358 : vector<2x32xf32>
    %360 = math.exp %359 : vector<2x32xf32>
    %cst_193 = arith.constant 1.000000e+00 : f32
    %361 = vector.broadcast %cst_193 : f32 to vector<2x32xf32>
    %362 = arith.addf %361, %360 : vector<2x32xf32>
    %363 = arith.divf %361, %362 : vector<2x32xf32>
    %364 = vector.extract_strided_slice %356 {offsets = [0, 32], sizes = [2, 32], strides = [1, 1]} : vector<2x96xf32> to vector<2x32xf32>
    %365 = arith.addf %364, %323 : vector<2x32xf32>
    %366 = arith.negf %365 : vector<2x32xf32>
    %367 = math.exp %366 : vector<2x32xf32>
    %cst_194 = arith.constant 1.000000e+00 : f32
    %368 = vector.broadcast %cst_194 : f32 to vector<2x32xf32>
    %369 = arith.addf %368, %367 : vector<2x32xf32>
    %370 = arith.divf %368, %369 : vector<2x32xf32>
    %371 = vector.extract_strided_slice %356 {offsets = [0, 64], sizes = [2, 32], strides = [1, 1]} : vector<2x96xf32> to vector<2x32xf32>
    %372 = arith.mulf %363, %324 : vector<2x32xf32>
    %373 = arith.addf %371, %372 : vector<2x32xf32>
    %374 = math.tanh %373 : vector<2x32xf32>
    %cst_195 = arith.constant 1.000000e+00 : f32
    %375 = vector.broadcast %cst_195 : f32 to vector<2x32xf32>
    %376 = arith.subf %375, %370 : vector<2x32xf32>
    %377 = arith.mulf %376, %374 : vector<2x32xf32>
    %378 = arith.mulf %370, %314 : vector<2x32xf32>
    %379 = arith.addf %377, %378 : vector<2x32xf32>
    %c0_196 = arith.constant 0 : index
    %c0_197 = arith.constant 0 : index
    %380 = vector.load %arg15[%c0_196, %c0_197] : memref<2x32xf32, #tpu.memory_space<vmem>>, vector<2x32xf32>
    tpu.vector_store %arg15[%c0_196, %c0_197], %379 {strides = array<i32>} : memref<2x32xf32, #tpu.memory_space<vmem>>, vector<2x32xf32>,
    %c0_198 = arith.constant 0 : index
    %c0_199 = arith.constant 0 : index
    %381 = vector.load %arg12[%c0_198, %c0_199] : memref<32x128xf32, #tpu.memory_space<vmem>>, vector<32x128xf32>
    %cst_200 = arith.constant dense<0.000000e+00> : vector<2x128xf32>
    %382 = tpu.matmul %379, %381, %cst_200 {dimension_numbers = #tpu.dot_dimension_numbers<[1], [0], [0], [1], [0, 0, 1, 1], [], []>} : vector<2x32xf32>, vector<32x128xf32>, vector<2x128xf32> -> vector<2x128xf32>
    %c0_201 = arith.constant 0 : index
    %c0_202 = arith.constant 0 : index
    %383 = vector.load %arg13[%c0_201, %c0_202] : memref<1x128xf32, #tpu.memory_space<vmem>>, vector<1x128xf32>
    %384 = vector.broadcast %383 : vector<1x128xf32> to vector<2x128xf32>
    %385 = arith.addf %382, %384 : vector<2x128xf32>
    %cst_203 = arith.constant dense<0xFF800000> : vector<2xf32>
    %386 = vector.multi_reduction <maximumf>, %385, %cst_203 [1] : vector<2x128xf32> to vector<2xf32>
    %387 = vector.shape_cast %386 : vector<2xf32> to vector<2x1xf32>
    %388 = vector.broadcast %387 : vector<2x1xf32> to vector<2x128xf32>
    %389 = arith.subf %385, %388 : vector<2x128xf32>
    %390 = math.exp %389 : vector<2x128xf32>
    %cst_204 = arith.constant dense<0.000000e+00> : vector<2xf32>
    %391 = vector.multi_reduction <add>, %390, %cst_204 [1] : vector<2x128xf32> to vector<2xf32>
    %392 = vector.shape_cast %391 : vector<2xf32> to vector<2x1xf32>
    %393 = math.log %392 : vector<2x1xf32>
    %394 = arith.addf %393, %387 : vector<2x1xf32>
    %395 = vector.broadcast %394 : vector<2x1xf32> to vector<2x128xf32>
    %396 = arith.subf %385, %395 : vector<2x128xf32>
    %397 = vector.shape_cast %396 : vector<2x128xf32> to vector<2x1x128xf32>
    %c0_205 = arith.constant 0 : index
    %c3 = arith.constant 3 : index
    %c0_206 = arith.constant 0 : index
    %398 = vector.load %arg14[%c0_205, %c3, %c0_206] : memref<2x4x128xf32, #tpu.memory_space<vmem>>, vector<2x1x128xf32>
    tpu.vector_store %arg14[%c0_205, %c3, %c0_206], %397 {strides = array<i32>} : memref<2x4x128xf32, #tpu.memory_space<vmem>>, vector<2x1x128xf32>,
    %399 = tpu.iota {dimensions = array<i32: 1>} : vector<2x128xi32>
    %400 = vector.broadcast %387 : vector<2x1xf32> to vector<2x128xf32>
    %401 = arith.cmpf oeq, %385, %400 : vector<2x128xf32>
    %c128_i32_207 = arith.constant 128 : i32
    %402 = vector.broadcast %c128_i32_207 : i32 to vector<2x128xi32>
    %403 = arith.select %401, %399, %402 : vector<2x128xi1>, vector<2x128xi32>
    %cst_208 = arith.constant dense<2147483647> : vector<2xi32>
    %404 = vector.multi_reduction <minsi>, %403, %cst_208 [1] : vector<2x128xi32> to vector<2xi32>
    %405 = vector.shape_cast %404 : vector<2xi32> to vector<2x1xi32>
    %406 = vector.broadcast %405 : vector<2x1xi32> to vector<2x128xi32>
    %407 = arith.cmpi eq, %399, %406 : vector<2x128xi32>
    %408 = arith.extui %407 : vector<2x128xi1> to vector<2x128xi32>
    %409 = arith.sitofp %408 : vector<2x128xi32> to vector<2x128xf32>
    %c0_209 = arith.constant 0 : index
    %c0_210 = arith.constant 0 : index
    %410 = vector.load %arg3[%c0_209, %c0_210] : memref<128x64xf32, #tpu.memory_space<vmem>>, vector<128x64xf32>
    %cst_211 = arith.constant dense<0.000000e+00> : vector<2x64xf32>
    %411 = tpu.matmul %409, %410, %cst_211 {dimension_numbers = #tpu.dot_dimension_numbers<[1], [0], [0], [1], [0, 0, 1, 1], [], []>} : vector<2x128xf32>, vector<128x64xf32>, vector<2x64xf32> -> vector<2x64xf32>
    %c0_212 = arith.constant 0 : index
    %c0_213 = arith.constant 0 : index
    %412 = vector.load %arg16[%c0_212, %c0_213] : memref<2x64xf32, #tpu.memory_space<vmem>>, vector<2x64xf32>
    tpu.vector_store %arg16[%c0_212, %c0_213], %411 {strides = array<i32>} : memref<2x64xf32, #tpu.memory_space<vmem>>, vector<2x64xf32>,
    return
  }
  func.func @transform_0(%arg0: i32) -> (i32, i32, i32) {
    %c0_i32 = arith.constant 0 : i32
    %c0_i32_0 = arith.constant 0 : i32
    %c0_i32_1 = arith.constant 0 : i32
    return %arg0, %c0_i32, %c0_i32_0 : i32, i32, i32
  }
  func.func @transform_1(%arg0: i32) -> (i32, i32, i32) {
    %c0_i32 = arith.constant 0 : i32
    %c0_i32_0 = arith.constant 0 : i32
    %c0_i32_1 = arith.constant 0 : i32
    return %arg0, %c0_i32, %c0_i32_0 : i32, i32, i32
  }
  func.func @transform_2(%arg0: i32) -> (i32, i32) {
    %c0_i32 = arith.constant 0 : i32
    %c0_i32_0 = arith.constant 0 : i32
    %c0_i32_1 = arith.constant 0 : i32
    return %c0_i32, %c0_i32_0 : i32, i32
  }
  func.func @transform_3(%arg0: i32) -> (i32, i32) {
    %c0_i32 = arith.constant 0 : i32
    %c0_i32_0 = arith.constant 0 : i32
    %c0_i32_1 = arith.constant 0 : i32
    return %c0_i32, %c0_i32_0 : i32, i32
  }
  func.func @transform_4(%arg0: i32) -> (i32, i32) {
    %c0_i32 = arith.constant 0 : i32
    %c0_i32_0 = arith.constant 0 : i32
    %c0_i32_1 = arith.constant 0 : i32
    return %c0_i32, %c0_i32_0 : i32, i32
  }
  func.func @transform_5(%arg0: i32) -> (i32, i32) {
    %c0_i32 = arith.constant 0 : i32
    %c0_i32_0 = arith.constant 0 : i32
    %c0_i32_1 = arith.constant 0 : i32
    return %c0_i32, %c0_i32_0 : i32, i32
  }
  func.func @transform_6(%arg0: i32) -> (i32, i32) {
    %c0_i32 = arith.constant 0 : i32
    %c0_i32_0 = arith.constant 0 : i32
    %c0_i32_1 = arith.constant 0 : i32
    return %c0_i32, %c0_i32_0 : i32, i32
  }
  func.func @transform_7(%arg0: i32) -> (i32, i32) {
    %c0_i32 = arith.constant 0 : i32
    %c0_i32_0 = arith.constant 0 : i32
    %c0_i32_1 = arith.constant 0 : i32
    return %c0_i32, %c0_i32_0 : i32, i32
  }
  func.func @transform_8(%arg0: i32) -> (i32, i32) {
    %c0_i32 = arith.constant 0 : i32
    %c0_i32_0 = arith.constant 0 : i32
    %c0_i32_1 = arith.constant 0 : i32
    return %c0_i32, %c0_i32_0 : i32, i32
  }
  func.func @transform_9(%arg0: i32) -> (i32, i32) {
    %c0_i32 = arith.constant 0 : i32
    %c0_i32_0 = arith.constant 0 : i32
    %c0_i32_1 = arith.constant 0 : i32
    return %c0_i32, %c0_i32_0 : i32, i32
  }
  func.func @transform_10(%arg0: i32) -> (i32, i32) {
    %c0_i32 = arith.constant 0 : i32
    %c0_i32_0 = arith.constant 0 : i32
    %c0_i32_1 = arith.constant 0 : i32
    return %c0_i32, %c0_i32_0 : i32, i32
  }
  func.func @transform_11(%arg0: i32) -> (i32, i32) {
    %c0_i32 = arith.constant 0 : i32
    %c0_i32_0 = arith.constant 0 : i32
    %c0_i32_1 = arith.constant 0 : i32
    return %c0_i32, %c0_i32_0 : i32, i32
  }
  func.func @transform_12(%arg0: i32) -> (i32, i32) {
    %c0_i32 = arith.constant 0 : i32
    %c0_i32_0 = arith.constant 0 : i32
    %c0_i32_1 = arith.constant 0 : i32
    return %c0_i32, %c0_i32_0 : i32, i32
  }
  func.func @transform_13(%arg0: i32) -> (i32, i32, i32) {
    %c0_i32 = arith.constant 0 : i32
    %c0_i32_0 = arith.constant 0 : i32
    %c0_i32_1 = arith.constant 0 : i32
    return %arg0, %c0_i32, %c0_i32_0 : i32, i32, i32
  }
}

</mosaic_0001>

<bundles_post_ra>
// kernel: tpu_custom_call.1
= control target key start
LH: loop header
LB: loop body
LE: loop exit
PB: predicated region body
PF: predicated region fallthrough
CT: control target
= control target key end

     0   :  { %s4743_s0 = inlined_call_operand.vmem [shape: f32[2,8,32], index: 0, kind: input, shape index: {}]   ;;  %s4744_s1 = inlined_call_operand.vmem [shape: f32[1,2,32], index: 1, kind: input, shape index: {}]   ;;  %s4745_s2 = inlined_call_operand.vmem [shape: f32[128,64], index: 2, kind: input, shape index: {}]   ;;  %s4746_s3 = inlined_call_operand.vmem [shape: f32[32,32], index: 3, kind: input, shape index: {}]   ;;  %s4747_s4 = inlined_call_operand.vmem [shape: f32[1,32], index: 4, kind: input, shape index: {}]   ;;  %s4748_s5 = inlined_call_operand.vmem [shape: f32[32,128], index: 5, kind: input, shape index: {}]   ;;  %s4749_s6 = inlined_call_operand.vmem [shape: f32[1,128], index: 6, kind: input, shape index: {}]   ;;  %s4750_s7 = inlined_call_operand.vmem [shape: f32[32,1], index: 7, kind: input, shape index: {}]   ;;  %s4751_s8 = inlined_call_operand.<no memory space> [shape: f32[1,1], index: 8, kind: input, shape index: {}]   ;;  %s4752_s9 = inlined_call_operand.vmem [shape: f32[96,96], index: 9, kind: input, shape index: {}]   ;;  %s4753_s10 = inlined_call_operand.vmem [shape: f32[1,96], index: 10, kind: input, shape index: {}]   ;;  %s4754_s11 = inlined_call_operand.vmem [shape: f32[32,128], index: 11, kind: input, shape index: {}]   ;;  %s4755_s12 = inlined_call_operand.vmem [shape: f32[1,128], index: 12, kind: input, shape index: {}]   ;;  %s4756_s13 = inlined_call_operand.hbm [shape: f32[2,4,128], index: 13, kind: output, shape index: {}]  }
   0x1   :  { %v18_v0 = vstv %s4751_s8 }
   0x2   :  { %19 = vst [vmem:[#allocation5] sm:$0x1] %v18_v0 }
   0x3   :  { %v49_v1 = vld [vmem:[%s4746_s3] sm:$0xff]  ;;  %v50_v2 = vld [vmem:[%s4746_s3 + $0x8] sm:$0xff]  ;;  %v51_v3 = vld [vmem:[%s4746_s3 + $0x10] sm:$0xff]  ;;  %vm53_vm0 = vcmask 261120   ;;  %vm147_vm1 = vcmask 254976  }
   0x4   :  { %v3412_v4 = vpack.c.bf16 %v50_v2, %v49_v1  ;;  %v52_v5 = vld [vmem:[%s4746_s3 + $0x18] sm:$0xff]  ;;  %v3892_v6 = vld [vmem:[%s4743_s0] sm:$0xff] }
   0x5   :  { %v3416_v7 = vpack.c.bf16 %v52_v5, %v51_v3  ;;  %3029 = vmatprep.mubr.msk.f32.mxu1 %vm53_vm0, %v3892_v6  ;;  %v146_v8 = vld [vmem:[%s4744_s1] sm:$0x3] }
   0x6   :  { %3413 = vmatprep.subr.bf16.mxu1 %v3412_v4 }
   0x7   :  { %20 = vsyncpa [#allocation7], 0  ;;  %3415 = vmatpush3.bf16.msra.mxu1 %v3412_v4  ;;  %148 = vst.msk [vmem:[#allocation2] sm:$0x3] %vm147_vm1, %v146_v8  ;;  %v158_v9 = vld [vmem:[%s4748_s5] sm:$0xff]  ;;  %v159_v10 = vld [vmem:[%s4748_s5 + $0x8] sm:$0xff]  ;;  %v246_v28 = vlaneseq }
   0x8   :  { %3417 = vmatprep.subr.bf16.mxu1 %v3416_v7  ;;  %v3909_v11 = vld [vmem:[%s4743_s0 + $0x8] sm:$0xff]  ;;  %v3911_v12 = vpack.c.bf16 %v159_v10, %v158_v9  ;;  %v3793_v13 = vmov 0.0|0.0   ;;  %v160_v14 = vld [vmem:[%s4748_s5 + $0x10] sm:$0xff]  ;;  %v161_v15 = vld [vmem:[%s4748_s5 + $0x18] sm:$0xff]  ;;  %vm3794_vm2 = vmmov 0   ;;  %v3795_v17 = vmov 0.0  }
   0x9   :  { %v3923_v16 = vpack.c.bf16 %v161_v15, %v160_v14  ;;  %v281_v19 = vld [vmem:[%s4750_s7] sm:$0xff]  ;;  %v282_v20 = vld [vmem:[%s4750_s7 + $0x8] sm:$0xff]  ;;  %v283_v21 = vld [vmem:[%s4750_s7 + $0x10] sm:$0xff]  ;;  %v3796_v26 = vmov 1966171168   ;;  %v247_v34 = vshrl.u32 %v246_v28, 7 }
   0xa   :  { %v3945_v22 = vpack.c.bf16 %v282_v20, %v281_v19  ;;  %v284_v23 = vld [vmem:[%s4750_s7 + $0x18] sm:$0xff]  ;;  %v2773_v25 = vld [vmem:[%s4747_s4] ss:$0 sm:$0xff]  ;;  %v244_v27 = vunpack.c.l.s4 %v3796_v26  ;;  %v3797_v53 = vmov 0   ;;  %v3991_v54 = vld [vmem:[#allocation5] ss:$0 sm:$0xff] }
   0xb   :  { %3419 = vmatpush3.bf16.msra.mxu1 %v3416_v7  ;;  %v3950_v24 = vpack.c.bf16 %v284_v23, %v283_v21  ;;  %v3966_v35 = vld [vmem:[%s4749_s6] ss:$0 sm:$0xff]  ;;  %v3975_v41 = vsub.s32 0, %v247_v34  ;;  %3679 = vset.pattern.permute.xlu0 %v3797_v53  ;;  %vm373_vm3 = vcmask 7168   ;;  %s3798_s4 = smov 32   ;;  %vm154_vm4 = vcmask 517120  }
   0xc   :  { %3420 = vmatprep.subr.bf16.mxu1 %v3793_v13  ;;  %3427 = vmatprep.subr.bf16.mxu0 %v3945_v22  ;;  %v245_v33 = vunpack.c.0.s8 %v244_v27  ;;  %vm442_vm5 = vcmask 1041409   ;;  %s3799_s27 = smov 64   ;;  %s3800_s28 = smov 96   ;;  %vm447_vm6 = vcmask 523264   ;;  %vm468_vm7 = vcmask 785408  }
   0xd   :  { %3429 = vmatpush3.bf16.msra.mxu0 %v3945_v22  ;;  %3680 = vset.pattern.permute.xlu1 %v3797_v53  ;;  %v452_v53 = vld [vmem:[%s4752_s9 + $0x18] sm:$0xff]  ;;  %vm661_vm8 = vcmask 1041408  }
   0xe   :  { %3030 = vmatmul.mubr.msk.f32.vlgmr.msra.gmra.mrb[0].mxu1 %vm53_vm0, %v3909_v11  ;;  %v3929_v18 = vld [vmem:[#allocation2] sm:$0x3]  ;;  %3431 = vmatprep.subr.bf16.mxu0 %v3950_v24  ;;  %v3968_v36 = vsub.s32 %v245_v33, %v247_v34 }
   0xf   :  { %3422 = vmatpush3.bf16.msra.mxu1 %v3911_v12  ;;  %3040 = vmatprep.mubr.msk.f32.mxu1 %vm3794_vm2, %v3795_v17 }
  0x10   :  { %3423 = vmatprep.subr.bf16.mxu1 %v3793_v13 }
  0x11   :  { %3433 = vmatpush3.bf16.msra.mxu0 %v3950_v24 }
  0x12   :  { %3452 = vmatprep.subr.bf16.mxu0 %v3793_v13 }
  0x13   :  { %3425 = vmatpush3.bf16.msra.mxu1 %v3923_v16 }
  0x14   :  { %3434 = vmatprep.subr.bf16.mxu1 %v3793_v13 }
  0x16   :  { %3041 = vmatmul.mubr.msk.f32.vlgmr.msra.gmra.mrb[2].mxu1 %vm53_vm0, %v3929_v18 }
  0x17   :  { %3078 = vmatprep.mubr.msk.f32.mxu1 %vm3794_vm2, %v3795_v17 }
  0xe1   :  { %v3031_v29 = vpop.f32.mrb[0].mxu1 }
  0xe2   :  { %v143_v30 = vadd.f32 %v3031_v29, %v2773_v25  ;;  %v126_v31 = vpop.f32.mrb[1].mxu1 }
  0xe3   :  { %v142_v32 = vadd.f32 %v2773_v25, %v126_v31 }
  0xe4   :  { %145 = vst.msk [vmem:[#allocation4 + $0x8] sm:$0xff] %vm53_vm0, %v143_v30 }
  0xe5   :  { %144 = vst.msk [vmem:[#allocation4] sm:$0xff] %vm53_vm0, %v142_v32 }
  0xe9   :  { %v238_v37 = vpop.f32.mrb[2].mxu1 }
  0xea   :  { %v3971_v38 = vadd.f32 %v3966_v35, %v238_v37  ;;  %v3042_v39 = vpop.f32.mrb[3].mxu1 }
  0xeb   :  { %v3984_v49 = vld [vmem:[#allocation4 + $0x8] sm:$0xff] }
  0xec   :  { %v249_v40 = vrot.slane %v3971_v38, %v3968_v36  ;;  %v3980_v46 = vld [vmem:[#allocation4] sm:$0xff] }
  0xee   :  { %v250_v42 = vcombine.high %v249_v40, %v249_v40  ;;  %v257_v43 = vrot.slane %v249_v40, %v3968_v36 }
  0xf0   :  { %v264_v44 = vrot.slane %v250_v42, %v3968_v36  ;;  %v270_v45 = vrot.slane %v257_v43, %v3975_v41 }
  0xf2   :  { %v274_v47 = vrot.slane %v264_v44, %v3975_v41  ;;  %v277_v48 = vadd.f32 %v270_v45, %v3980_v46 }
  0xf4   :  { %v278_v50 = vadd.f32 %v274_v47, %v3984_v49  ;;  %3681 = vtanh.f32 %v277_v48  ;;  %v449_v48 = vld [vmem:[%s4752_s9] sm:$0xff] }
  0xf6   :  { %3683 = vtanh.f32 %v278_v50  ;;  %v450_v50 = vld [vmem:[%s4752_s9 + $0x8] sm:$0xff] }
  0xfe   :  { %v3682_v51 = vpop.eup %3681 }
  0xff   :  { %3051 = vmatprep.mubr.msk.f32.mxu0 %vm53_vm0, %v3682_v51  ;;  %v451_v51 = vld [vmem:[%s4752_s9 + $0x10] sm:$0xff] }
 0x100   :  { %v3684_v52 = vpop.eup %3683 }
 0x101   :  { %3052 = vmatmul.mubr.msk.f32.vlgmr.msra.gmra.mrb[0].mxu0 %vm53_vm0, %v3684_v52  ;;  %v4010_v52 = vpack.c.bf16 %v450_v50, %v449_v48 }
 0x102   :  { %3089 = vmatprep.mubr.msk.f32.mxu0 %vm3794_vm2, %v3795_v17 }
 0x103   :  { %3436 = vmatpush3.bf16.msra.mxu1 %v4010_v52 }
 0x104   :  { %3437 = vmatprep.subr.bf16.mxu1 %v3793_v13 }
 0x1d4   :  { %v3053_v55 = vpop.f32.mrb[0].mxu0 }
 0x1d5   :  { %v370_v56 = vadd.f32 %v3053_v55, %v3991_v54  ;;  %v364_v57 = vpop.f32.mrb[1].mxu0  ;;  %v4016_v55 = vpack.c.bf16 %v452_v53, %v451_v51 }
 0x1d6   :  { %v365_v58 = vadd.f32 %v3991_v54, %v364_v57  ;;  %v454_v57 = vld [vmem:[%s4752_s9 + $0x28] sm:$0xff] }
 0x1d7   :  { %v381_v59 = vsel %vm373_vm3, %v370_v56, -inf  ;;  %3439 = vmatpush3.bf16.msra.mxu1 %v4016_v55 }
 0x1d8   :  { %v382_v60 = vrot.slane %v381_v59, 4  ;;  %v374_v61 = vsel %vm373_vm3, %v365_v58, -inf  ;;  %3440 = vmatprep.subr.bf16.mxu1 %v3793_v13 }
 0x1d9   :  { %v375_v62 = vrot.slane %v374_v61, 4 }
 0x1da   :  { %v383_v63 = vmax.f32 %v381_v59, %v382_v60  ;;  %v455_v60 = vld [vmem:[%s4752_s9 + $0x30] sm:$0xff] }
 0x1db   :  { %v376_v0 = vmax.f32 %v374_v61, %v375_v62  ;;  %v456_v61 = vld [vmem:[%s4752_s9 + $0x38] sm:$0xff] }
 0x1dc   :  { %v384_v1 = vrot.slane %v383_v63, 2  ;;  %v4040_v62 = vpack.c.bf16 %v456_v61, %v455_v60  ;;  %v578_v60 = vld [vmem:[%s4754_s11] sm:$0xff]  ;;  %v579_v61 = vld [vmem:[%s4754_s11 + $0x8] sm:$0xff] }
 0x1dd   :  { %v377_v2 = vrot.slane %v376_v0, 2 }
 0x1de   :  { %v385_v3 = vmax.f32 %v383_v63, %v384_v1  ;;  %v457_v63 = vld [vmem:[%s4752_s9 + $0x40] sm:$0xff] }
 0x1df   :  { %v378_v4 = vmax.f32 %v376_v0, %v377_v2  ;;  %v458_v0 = vld [vmem:[%s4752_s9 + $0x48] sm:$0xff]  ;;  %v459_v2 = vld [vmem:[%s4752_s9 + $0x50] sm:$0xff] }
 0x1e0   :  { %v386_v5 = vrot.slane %v385_v3, 1  ;;  %v4050_v1 = vpack.c.bf16 %v458_v0, %v457_v63  ;;  %v580_v63 = vld [vmem:[%s4754_s11 + $0x10] sm:$0xff]  ;;  %v4099_v0 = vpack.c.bf16 %v579_v61, %v578_v60  ;;  %v731_v60 = vld [vmem:[%s4745_s2 + $0x38] sm:$0xff] }
 0x1e1   :  { %v379_v7 = vrot.slane %v378_v4, 1 }
 0x1e2   :  { %v387_v8 = vmax.f32 %v385_v3, %v386_v5  ;;  %v460_v3 = vld [vmem:[%s4752_s9 + $0x58] sm:$0xff]  ;;  %3454 = vmatpush3.bf16.msra.mxu0 %v4099_v0 }
 0x1e3   :  { %v380_v9 = vmax.f32 %v378_v4, %v379_v7  ;;  %v4060_v4 = vpack.c.bf16 %v460_v3, %v459_v2  ;;  %3455 = vmatprep.subr.bf16.mxu0 %v3793_v13 }
 0x1e4   :  { %v389_v10 = vsub.f32 %v370_v56, %v387_v8  ;;  %v453_v56 = vld [vmem:[%s4752_s9 + $0x20] sm:$0xff] }
 0x1e5   :  { %v388_v14 = vsub.f32 %v365_v58, %v380_v9  ;;  %v2774_v58 = vld [vmem:[%s4745_s2] ss:$0 sm:$0xff]  ;;  %v4030_v59 = vpack.c.bf16 %v454_v57, %v453_v56 }
 0x1e6   :  { %v392_v15 = vmul.f32 1.442695, %v389_v10  ;;  %155 = vst.msk [vmem:[#allocation3] sm:$0x3] %vm154_vm4, %v2774_v58 }
 0x1e7   :  { %v390_v19 = vmul.f32 1.442695, %v388_v14  ;;  %3442 = vmatpush3.bf16.msra.mxu1 %v4030_v59 }
 0x1e8   :  { %3685 = vpow2.f32 %v392_v15  ;;  %3443 = vmatprep.subr.bf16.mxu1 %v3793_v13 }
 0x1e9   :  { %3687 = vpow2.f32 %v390_v19 }
 0x1eb   :  { %3445 = vmatpush3.bf16.msra.mxu1 %v4040_v62 }
 0x1ec   :  { %3446 = vmatprep.subr.bf16.mxu1 %v3793_v13 }
 0x1ef   :  { %3448 = vmatpush3.bf16.msra.mxu1 %v4050_v1 }
 0x1f0   :  { %3449 = vmatprep.subr.bf16.mxu1 %v3793_v13 }
 0x1f2   :  { %v3686_v20 = vpop.eup %3685 }
 0x1f3   :  { %v3688_v21 = vpop.eup %3687  ;;  %v401_v23 = vsel %vm373_vm3, %v3686_v20, 0.0  ;;  %3451 = vmatpush3.bf16.msra.mxu1 %v4060_v4 }
 0x1f4   :  { %v402_v25 = vrot.slane %v401_v23, 4  ;;  %v394_v26 = vsel %vm373_vm3, %v3688_v21, 0.0  ;;  %3482 = vmatprep.subr.bf16.mxu1 %v3793_v13 }
 0x1f5   :  { %v395_v27 = vrot.slane %v394_v26, 4 }
 0x1f6   :  { %v403_v29 = vadd.f32 %v402_v25, %v401_v23 }
 0x1f7   :  { %v396_v30 = vadd.f32 %v395_v27, %v394_v26 }
 0x1f8   :  { %v404_v31 = vrot.slane %v403_v29, 2 }
 0x1f9   :  { %v397_v32 = vrot.slane %v396_v30, 2 }
 0x1fa   :  { %v405_v33 = vadd.f32 %v404_v31, %v403_v29 }
 0x1fb   :  { %v398_v34 = vadd.f32 %v397_v32, %v396_v30 }
 0x1fc   :  { %v406_v37 = vrot.slane %v405_v33, 1 }
 0x1fd   :  { %v399_v39 = vrot.slane %v398_v34, 1 }
 0x1fe   :  { %v407_v42 = vadd.f32 %v406_v37, %v405_v33 }
 0x1ff   :  { %v400_v40 = vadd.f32 %v399_v39, %v398_v34  ;;  %v157_v34 = vld [vmem:[#allocation3] sm:$0x3] }
 0x201   :  { %3689 = vrcp.f32 %v400_v40 }
 0x202   :  { %3691 = vrcp.f32 %v407_v42 }
 0x20b   :  { %v3690_v43 = vpop.eup %3689 }
 0x20c   :  { %v410_v44 = vmul.f32 %v3690_v43, %v3688_v21  ;;  %v3692_v45 = vpop.eup %3691 }
 0x20d   :  { %v411_v47 = vmul.f32 %v3692_v45, %v3686_v20 }
 0x20e   :  { %416 = vperm.xlu0 %3679, %v410_v44  }
 0x212   :  { %421 = vperm.xlu0 %3679, %v411_v47  }
 0x216   :  { %552 = vrot.lane.b32.xlu0 %v3971_v38, %s3798_s4 }
 0x28d   :  { %v417_v5 = vpop.permute.xlu0 %416 }
 0x28e   :  { %v424_v7 = vmul.f32 %v417_v5, %v3892_v6 }
 0x290   :  { %v426_v8 = vsel %vm53_vm0, %v424_v7, 0.0 }
 0x291   :  { %v427_v9 = vrot.slane %v426_v8, 4  ;;  %v422_v10 = vpop.permute.xlu0 %421 }
 0x292   :  { %v425_v14 = vmul.f32 %v422_v10, %v3909_v11 }
 0x293   :  { %v428_v15 = vadd.f32 %v427_v9, %v426_v8 }
 0x294   :  { %v433_v19 = vsel %vm53_vm0, %v425_v14, 0.0 }
 0x295   :  { %v429_v20 = vrot.slane %v428_v15, 2  ;;  %v434_v21 = vrot.slane %v433_v19, 4  ;;  %v553_v53 = vpop.permute.xlu0 %552 }
 0x297   :  { %v430_v23 = vadd.f32 %v429_v20, %v428_v15  ;;  %v435_v25 = vadd.f32 %v434_v21, %v433_v19  ;;  %v4127_v20 = vld [vmem:[%s4755_s12] ss:$0 sm:$0xff] }
 0x299   :  { %v436_v26 = vrot.slane %v435_v25, 2  ;;  %v431_v29 = vrot.slane %v430_v23, 1 }
 0x29b   :  { %v437_v27 = vadd.f32 %v436_v26, %v435_v25  ;;  %v432_v31 = vadd.f32 %v431_v29, %v430_v23 }
 0x29d   :  { %v438_v30 = vrot.slane %v437_v27, 1 }
 0x29f   :  { %v439_v32 = vadd.f32 %v438_v30, %v437_v27 }
 0x2a1   :  { %v443_v33 = vsel %vm442_vm5, %v439_v32, %v432_v31 }
 0x2a2   :  { %444 = vrot.lane.b32.xlu1 %v443_v33, %s3799_s27 }
 0x2a6   :  { %542 = vrot.lane.b32.xlu1 %v3971_v38, %s3800_s28  ;;  %v4084_v38 = vld [vmem:[%s4753_s10] ss:$0 sm:$0xff] }
 0x314   :  { %v445_v37 = vpop.permute.xlu1 %444 }
 0x315   :  { %v448_v39 = vsel %vm447_vm6, %v157_v34, %v445_v37 }
 0x316   :  { %3079 = vmatmul.mubr.msk.f32.vlgmr.msra.gmra.mrb[4].mxu1 %vm468_vm7, %v448_v39 }
 0x317   :  { %3484 = vmatpush3.bf16.msra.mxu1 %v3911_v12  ;;  %3135 = vmatprep.mubr.msk.f32.mxu1 %vm3794_vm2, %v3795_v17 }
 0x318   :  { %3485 = vmatprep.subr.bf16.mxu1 %v3793_v13  ;;  %v543_v44 = vpop.permute.xlu1 %542 }
 0x31b   :  { %3487 = vmatpush3.bf16.msra.mxu1 %v3923_v16 }
 0x31c   :  { %3489 = vmatprep.subr.bf16.mxu1 %v3945_v22 }
 0x3e9   :  { %v538_v40 = vpop.f32.mrb[4].mxu1 }
 0x3ea   :  { %v539_v42 = vadd.f32 %v4084_v38, %v538_v40  ;;  %v3080_v43 = vpop.f32.mrb[5].mxu1 }
 0x3ec   :  { %v545_v45 = vadd.f32 %v543_v44, %v539_v42 }
 0x3ee   :  { %v2782_v47 = vmul.f32 -1.442695, %v545_v45 }
 0x3f0   :  { %3693 = vpow2.f32 %v2782_v47  ;;  %v726_v47 = vld [vmem:[%s4745_s2 + $0x10] sm:$0xff] }
 0x3fa   :  { %v3694_v48 = vpop.eup %3693 }
 0x3fb   :  { %v549_v50 = vadd.f32 1.0, %v3694_v48 }
 0x3fd   :  { %3695 = vrcp.f32 %v549_v50  ;;  %v727_v50 = vld [vmem:[%s4745_s2 + $0x18] sm:$0xff] }
 0x407   :  { %v3696_v51 = vpop.eup %3695 }
 0x408   :  { %v555_v56 = vmul.f32 %v3696_v51, %v553_v53  ;;  %v562_v7 = vsub.f32 1.0, %v3696_v51  ;;  %v728_v53 = vld [vmem:[%s4745_s2 + $0x20] sm:$0xff] }
 0x40a   :  { %557 = vrot.lane.b32.xlu1 %v555_v56, %s3799_s27  ;;  %v729_v56 = vld [vmem:[%s4745_s2 + $0x28] sm:$0xff] }
 0x40e   :  { %568 = vrot.lane.b32.xlu1 %v3929_v18, %s3798_s4  ;;  %v581_v18 = vld [vmem:[%s4754_s11 + $0x18] sm:$0xff] }
 0x40f   :  { %v4105_v2 = vpack.c.bf16 %v581_v18, %v580_v63 }
 0x411   :  { %3457 = vmatpush3.bf16.msra.mxu0 %v4105_v2 }
 0x412   :  { %3458 = vmatprep.subr.bf16.mxu0 %v3793_v13 }
 0x47c   :  { %v558_v57 = vpop.permute.xlu1 %557 }
 0x47d   :  { %v560_v58 = vadd.f32 %v558_v57, %v539_v42  ;;  %v4201_v57 = vpack.c.bf16 %v729_v56, %v728_v53 }
 0x47f   :  { %3697 = vtanh.f32 %v560_v58  ;;  %v730_v58 = vld [vmem:[%s4745_s2 + $0x30] sm:$0xff] }
 0x480   :  { %v569_v5 = vpop.permute.xlu1 %568  ;;  %v4211_v61 = vpack.c.bf16 %v731_v60, %v730_v58 }
 0x481   :  { %v571_v9 = vmul.f32 %v3696_v51, %v569_v5  ;;  %v4191_v51 = vpack.c.bf16 %v727_v50, %v726_v47 }
 0x489   :  { %v3698_v3 = vpop.eup %3697 }
 0x48a   :  { %564 = vrot.lane.b32.xlu0 %v3698_v3, %s3800_s28 }
 0x4fc   :  { %v565_v8 = vpop.permute.xlu0 %564 }
 0x4fd   :  { %v567_v10 = vmul.f32 %v565_v8, %v562_v7 }
 0x4ff   :  { %v572_v14 = vadd.f32 %v571_v9, %v567_v10 }
 0x501   :  { %574 = vrot.lane.b32.xlu0 %v572_v14, %s3800_s28 }
 0x573   :  { %v575_v15 = vpop.permute.xlu0 %574 }
 0x574   :  { %577 = vst.msk [vmem:[#allocation2] sm:$0x3] %vm147_vm1, %v575_v15  ;;  %3090 = vmatmul.mubr.msk.f32.vlgmr.msra.gmra.mrb[2].mxu0 %vm53_vm0, %v575_v15 }
 0x575   :  { %3124 = vmatprep.mubr.msk.f32.mxu0 %vm3794_vm2, %v3795_v17 }
 0x57b   :  { %v4116_v19 = vld [vmem:[#allocation2] sm:$0x3] }
 0x57c   :  { %3136 = vmatmul.mubr.msk.f32.vlgmr.msra.gmra.mrb[6].mxu1 %vm53_vm0, %v4116_v19 }
 0x57d   :  { %3491 = vmatpush3.bf16.msra.mxu1 %v3945_v22 }
 0x57e   :  { %3493 = vmatprep.subr.bf16.mxu1 %v3950_v24 }
 0x581   :  { %3495 = vmatpush3.bf16.msra.mxu1 %v3950_v24 }
 0x582   :  { %3496 = vmatprep.subr.bf16.mxu1 %v3793_v13 }
 0x647   :  { %v657_v21 = vpop.f32.mrb[2].mxu0 }
 0x648   :  { %v4130_v23 = vadd.f32 %v4127_v20, %v657_v21  ;;  %v3091_v25 = vpop.f32.mrb[3].mxu0 }
 0x64a   :  { %v662_v26 = vsel %vm661_vm8, %v4130_v23, -inf }
 0x64b   :  { %663 = vmax.xlane.f32.xlu1 %v662_v26 }
 0x64f   :  { %v893_v27 = vpop.f32.mrb[6].mxu1 }
 0x650   :  { %v4135_v29 = vadd.f32 %v3966_v35, %v893_v27  ;;  %v3137_v30 = vpop.f32.mrb[7].mxu1 }
 0x652   :  { %v904_v31 = vrot.slane %v4135_v29, %v3968_v36 }
 0x654   :  { %v905_v32 = vcombine.high %v904_v31, %v904_v31  ;;  %v912_v33 = vrot.slane %v904_v31, %v3968_v36 }
 0x656   :  { %v919_v34 = vrot.slane %v905_v32, %v3968_v36  ;;  %v925_v37 = vrot.slane %v912_v33, %v3975_v41 }
 0x658   :  { %v929_v39 = vrot.slane %v919_v34, %v3975_v41  ;;  %v932_v40 = vadd.f32 %v925_v37, %v3980_v46 }
 0x65a   :  { %v933_v42 = vadd.f32 %v929_v39, %v3984_v49  ;;  %3699 = vtanh.f32 %v932_v40 }
 0x65c   :  { %3701 = vtanh.f32 %v933_v42 }
 0x664   :  { %v3700_v43 = vpop.eup %3699 }
 0x665   :  { %3146 = vmatprep.mubr.msk.f32.mxu1 %vm53_vm0, %v3700_v43 }
 0x666   :  { %v3702_v44 = vpop.eup %3701 }
 0x667   :  { %3147 = vmatmul.mubr.msk.f32.vlgmr.msra.gmra.mrb[8].mxu1 %vm53_vm0, %v3702_v44 }
 0x668   :  { %3498 = vmatpush3.bf16.msra.mxu1 %v4010_v52  ;;  %3173 = vmatprep.mubr.msk.f32.mxu1 %vm3794_vm2, %v3795_v17  ;;  %v4162_v52 = vand.u32 127, %v246_v28  ;;  %v724_v28 = vld [vmem:[%s4745_s2] sm:$0xff] }
 0x669   :  { %3499 = vmatprep.subr.bf16.mxu1 %v3793_v13 }
 0x66c   :  { %3501 = vmatpush3.bf16.msra.mxu1 %v4016_v55 }
 0x66d   :  { %3502 = vmatprep.subr.bf16.mxu1 %v3793_v13 }
 0x670   :  { %3504 = vmatpush3.bf16.msra.mxu1 %v4030_v59 }
 0x671   :  { %3505 = vmatprep.subr.bf16.mxu1 %v3793_v13 }
 0x674   :  { %3507 = vmatpush3.bf16.msra.mxu1 %v4040_v62 }
 0x675   :  { %3508 = vmatprep.subr.bf16.mxu1 %v3793_v13 }
 0x678   :  { %3510 = vmatpush3.bf16.msra.mxu1 %v4050_v1 }
 0x679   :  { %3511 = vmatprep.subr.bf16.mxu1 %v3793_v13 }
 0x67c   :  { %3513 = vmatpush3.bf16.msra.mxu1 %v4060_v4  ;;  %v725_v4 = vld [vmem:[%s4745_s2 + $0x8] sm:$0xff] }
 0x67d   :  { %3544 = vmatprep.subr.bf16.mxu1 %v3793_v13  ;;  %v4185_v48 = vpack.c.bf16 %v725_v4, %v724_v28 }
 0x67f   :  { %3460 = vmatpush3.bf16.msra.mxu0 %v4185_v48 }
 0x680   :  { %3461 = vmatprep.subr.bf16.mxu0 %v3793_v13 }
 0x683   :  { %3463 = vmatpush3.bf16.msra.mxu0 %v4191_v51 }
 0x684   :  { %3464 = vmatprep.subr.bf16.mxu0 %v3793_v13 }
 0x687   :  { %3466 = vmatpush3.bf16.msra.mxu0 %v4201_v57 }
 0x688   :  { %3467 = vmatprep.subr.bf16.mxu0 %v3793_v13 }
 0x68b   :  { %3469 = vmatpush3.bf16.msra.mxu0 %v4211_v61 }
 0x68c   :  { %3470 = vmatprep.subr.bf16.mxu0 %v3793_v13 }
 0x6d8   :  { %v4164_v55 = vpop.xlane.xlu1 %663 }
 0x6d9   :  { %vm704_vm9 = vcmp.eq.f32.partialorder %v4130_v23, %v4164_v55 }
 0x6da   :  { %v705_v59 = vsel %vm704_vm9, %v4162_v52, 128 }
 0x6db   :  { %v4170_v62 = vsel %vm661_vm8, %v705_v59, 2147483647 }
 0x6dc   :  { %v708_v1 = vshra.s32 %v4170_v62, 16 }
 0x6de   :  { %v4173_v45 = vcvt.s32.f32 %v708_v1 }
 0x6e0   :  { %711 = vmin.xlane.f32.xlu0 %v4173_v45 }
 0x73a   :  { %v3148_v63 = vpop.f32.mrb[8].mxu1 }
 0x73b   :  { %v1025_v18 = vadd.f32 %v3148_v63, %v3991_v54  ;;  %v1019_v3 = vpop.f32.mrb[9].mxu1  ;;  %v707_v63 = vand.u32 65535, %v4170_v62 }
 0x73c   :  { %v1020_v5 = vadd.f32 %v3991_v54, %v1019_v3 }
 0x73d   :  { %v1035_v7 = vsel %vm373_vm3, %v1025_v18, -inf }
 0x73e   :  { %v1036_v8 = vrot.slane %v1035_v7, 4  ;;  %v1028_v9 = vsel %vm373_vm3, %v1020_v5, -inf }
 0x73f   :  { %v1029_v10 = vrot.slane %v1028_v9, 4 }
 0x740   :  { %v1037_v14 = vmax.f32 %v1035_v7, %v1036_v8 }
 0x741   :  { %v1030_v15 = vmax.f32 %v1028_v9, %v1029_v10  ;;  %v732_v10 = vld [vmem:[%s4745_s2 + $0x40] sm:$0xff] }
 0x742   :  { %v1038_v21 = vrot.slane %v1037_v14, 2 }
 0x743   :  { %v1031_v25 = vrot.slane %v1030_v15, 2 }
 0x744   :  { %v1039_v26 = vmax.f32 %v1037_v14, %v1038_v21  ;;  %v733_v14 = vld [vmem:[%s4745_s2 + $0x48] sm:$0xff] }
 0x745   :  { %v1032_v27 = vmax.f32 %v1030_v15, %v1031_v25  ;;  %v4230_v21 = vpack.c.bf16 %v733_v14, %v732_v10  ;;  %v735_v25 = vld [vmem:[%s4745_s2 + $0x58] sm:$0xff] }
 0x746   :  { %v1040_v30 = vrot.slane %v1039_v26, 1 }
 0x747   :  { %v1033_v31 = vrot.slane %v1032_v27, 1  ;;  %3472 = vmatpush3.bf16.msra.mxu0 %v4230_v21 }
 0x748   :  { %v1041_v32 = vmax.f32 %v1039_v26, %v1040_v30  ;;  %3473 = vmatprep.subr.bf16.mxu0 %v3793_v13  ;;  %v737_v30 = vld [vmem:[%s4745_s2 + $0x68] sm:$0xff] }
 0x749   :  { %v1034_v33 = vmax.f32 %v1032_v27, %v1033_v31  ;;  %v736_v27 = vld [vmem:[%s4745_s2 + $0x60] sm:$0xff] }
 0x74a   :  { %v1043_v34 = vsub.f32 %v1025_v18, %v1041_v32  ;;  %v4250_v31 = vpack.c.bf16 %v737_v30, %v736_v27  ;;  %v738_v32 = vld [vmem:[%s4745_s2 + $0x70] sm:$0xff] }
 0x74b   :  { %v1042_v37 = vsub.f32 %v1020_v5, %v1034_v33  ;;  %v709_v5 = vcvt.s32.f32 %v707_v63  ;;  %v739_v33 = vld [vmem:[%s4745_s2 + $0x78] sm:$0xff] }
 0x74c   :  { %v1046_v39 = vmul.f32 1.442695, %v1043_v34  ;;  %v4260_v34 = vpack.c.bf16 %v739_v33, %v738_v32 }
 0x74d   :  { %v1044_v40 = vmul.f32 1.442695, %v1042_v37 }
 0x74e   :  { %3703 = vpow2.f32 %v1046_v39 }
 0x74f   :  { %3705 = vpow2.f32 %v1044_v40 }
 0x758   :  { %v3704_v42 = vpop.eup %3703 }
 0x759   :  { %v3706_v43 = vpop.eup %3705  ;;  %v1055_v1 = vsel %vm373_vm3, %v3704_v42, 0.0 }
 0x75a   :  { %v1048_v44 = vsel %vm373_vm3, %v3706_v43, 0.0  ;;  %v1056_v4 = vrot.slane %v1055_v1, 4 }
 0x75b   :  { %v1049_v59 = vrot.slane %v1048_v44, 4 }
 0x75c   :  { %v1057_v53 = vadd.f32 %v1056_v4, %v1055_v1 }
 0x75d   :  { %v1050_v28 = vadd.f32 %v1049_v59, %v1048_v44 }
 0x75e   :  { %v1058_v60 = vrot.slane %v1057_v53, 2 }
 0x75f   :  { %v1051_v47 = vrot.slane %v1050_v28, 2 }
 0x760   :  { %v1059_v18 = vadd.f32 %v1058_v60, %v1057_v53 }
 0x761   :  { %v1052_v50 = vadd.f32 %v1051_v47, %v1050_v28 }
 0x762   :  { %v1060_v8 = vrot.slane %v1059_v18, 1 }
 0x763   :  { %v1053_v56 = vrot.slane %v1052_v50, 1 }
 0x764   :  { %v1061_v62 = vadd.f32 %v1060_v8, %v1059_v18 }
 0x765   :  { %v1054_v58 = vadd.f32 %v1053_v56, %v1052_v50  ;;  %v3801_v56 = vmov 1.0  }
 0x767   :  { %3707 = vrcp.f32 %v1054_v58 }
 0x768   :  { %3709 = vrcp.f32 %v1061_v62 }
 0x76d   :  { %v712_v3 = vpop.xlane.xlu0 %711 }
 0x76e   :  { %vm713_vm10 = vcmp.eq.f32.partialorder %v4173_v45, %v712_v3  ;;  %v734_v45 = vld [vmem:[%s4745_s2 + $0x50] sm:$0xff]  ;;  %v718_v44 = vcvt.f32.s32 %v712_v3 }
 0x76f   :  { %v714_v7 = vsel %vm713_vm10, %v709_v5, inf  ;;  %v4240_v26 = vpack.c.bf16 %v735_v25, %v734_v45 }
 0x770   :  { %715 = vmin.xlane.f32.xlu0 %v714_v7  ;;  %v719_v28 = vshll.u32 %v718_v44, 16 }
 0x771   :  { %v3708_v9 = vpop.eup %3707  ;;  %3475 = vmatpush3.bf16.msra.mxu0 %v4240_v26 }
 0x772   :  { %v1064_v15 = vmul.f32 %v3708_v9, %v3706_v43  ;;  %3476 = vmatprep.subr.bf16.mxu0 %v3793_v13  ;;  %v3710_v37 = vpop.eup %3709 }
 0x773   :  { %v1065_v39 = vmul.f32 %v3710_v37, %v3704_v42 }
 0x774   :  { %1070 = vperm.xlu1 %3680, %v1064_v15  }
 0x775   :  { %3478 = vmatpush3.bf16.msra.mxu0 %v4250_v31 }
 0x776   :  { %3479 = vmatprep.subr.bf16.mxu0 %v3793_v13 }
 0x779   :  { %3481 = vmatpush3.bf16.msra.mxu0 %v4260_v34 }
 0x77a   :  { %3514 = vmatprep.subr.bf16.mxu0 %v3793_v13 }
 0x786   :  { %1075 = vperm.xlu0 %3679, %v1065_v39  }
 0x78a   :  { %1203 = vrot.lane.b32.xlu0 %v4135_v29, %s3798_s4 }
 0x7f3   :  { %v1071_v40 = vpop.permute.xlu1 %1070 }
 0x7f4   :  { %v1078_v43 = vmul.f32 %v1071_v40, %v3892_v6 }
 0x7f6   :  { %v1080_v59 = vsel %vm53_vm0, %v1078_v43, 0.0 }
 0x7f7   :  { %v1081_v47 = vrot.slane %v1080_v59, 4 }
 0x7f9   :  { %v1082_v53 = vadd.f32 %v1081_v47, %v1080_v59 }
 0x7fb   :  { %v1083_v58 = vrot.slane %v1082_v53, 2 }
 0x7fd   :  { %v716_v1 = vpop.xlane.xlu0 %715  ;;  %v1084_v18 = vadd.f32 %v1083_v58, %v1082_v53 }
 0x7fe   :  { %v717_v4 = vcvt.f32.s32 %v716_v1 }
 0x800   :  { %v720_v50 = vadd.s32 %v719_v28, %v717_v4 }
 0x802   :  { %vm721_vm11 = vcmp.eq.s32.totalorder %v4162_v52, %v720_v50 }
 0x803   :  { %3125 = vmatmul.mubr.msk.f32.vlgmr.msra.gmra.mrb[4].mxu0 %vm721_vm11, %v3801_v56 }
 0x804   :  { %3516 = vmatpush3.bf16.msra.mxu0 %v4099_v0  ;;  %3184 = vmatprep.mubr.msk.f32.mxu0 %vm3794_vm2, %v3795_v17  ;;  %v1085_v0 = vrot.slane %v1084_v18, 1 }
 0x805   :  { %v1076_v6 = vpop.permute.xlu0 %1075  ;;  %3517 = vmatprep.subr.bf16.mxu0 %v3793_v13 }
 0x806   :  { %v1079_v42 = vmul.f32 %v1076_v6, %v3909_v11  ;;  %v1086_v9 = vadd.f32 %v1085_v0, %v1084_v18 }
 0x808   :  { %v1087_v60 = vsel %vm53_vm0, %v1079_v42, 0.0  ;;  %3519 = vmatpush3.bf16.msra.mxu0 %v4105_v2 }
 0x809   :  { %v1088_v63 = vrot.slane %v1087_v60, 4  ;;  %3520 = vmatprep.subr.bf16.mxu0 %v3793_v13  ;;  %v1204_v40 = vpop.permute.xlu0 %1203 }
 0x80b   :  { %v1089_v3 = vadd.f32 %v1088_v63, %v1087_v60 }
 0x80d   :  { %v1090_v5 = vrot.slane %v1089_v3, 2 }
 0x80f   :  { %v1091_v7 = vadd.f32 %v1090_v5, %v1089_v3 }
 0x811   :  { %v1092_v8 = vrot.slane %v1091_v7, 1 }
 0x813   :  { %v1093_v10 = vadd.f32 %v1092_v8, %v1091_v7 }
 0x815   :  { %v1096_v14 = vsel %vm442_vm5, %v1093_v10, %v1086_v9 }
 0x816   :  { %1097 = vrot.lane.b32.xlu1 %v1096_v14, %s3799_s27 }
 0x81a   :  { %1193 = vrot.lane.b32.xlu1 %v4135_v29, %s3800_s28 }
 0x888   :  { %v1098_v15 = vpop.permute.xlu1 %1097 }
 0x88c   :  { %v1194_v30 = vpop.permute.xlu1 %1193 }
 0x8d6   :  { %v806_v11 = vpop.f32.mrb[4].mxu0 }
 0x8d7   :  { %810 = vst.msk [vmem:[#allocation3] sm:$0x3] %vm154_vm4, %v806_v11  ;;  %v3126_v2 = vpop.f32.mrb[5].mxu0 }
 0x8de   :  { %v812_v62 = vld [vmem:[#allocation3] sm:$0x3] }
 0x8df   :  { %v1100_v45 = vsel %vm447_vm6, %v812_v62, %v1098_v15 }
 0x8e0   :  { %3174 = vmatmul.mubr.msk.f32.vlgmr.msra.gmra.mrb[10].mxu1 %vm468_vm7, %v1100_v45 }
 0x8e1   :  { %3546 = vmatpush3.bf16.msra.mxu1 %v3911_v12  ;;  %3230 = vmatprep.mubr.msk.f32.mxu1 %vm3794_vm2, %v3795_v17 }
 0x8e2   :  { %3547 = vmatprep.subr.bf16.mxu1 %v3793_v13 }
 0x8e5   :  { %3549 = vmatpush3.bf16.msra.mxu1 %v3923_v16 }
 0x8e6   :  { %3551 = vmatprep.subr.bf16.mxu1 %v3945_v22 }
 0x9b3   :  { %v1189_v29 = vpop.f32.mrb[10].mxu1 }
 0x9b4   :  { %v1190_v25 = vadd.f32 %v4084_v38, %v1189_v29  ;;  %v3175_v27 = vpop.f32.mrb[11].mxu1 }
 0x9b6   :  { %v1196_v32 = vadd.f32 %v1194_v30, %v1190_v25 }
 0x9b8   :  { %v2796_v33 = vmul.f32 -1.442695, %v1196_v32 }
 0x9ba   :  { %3711 = vpow2.f32 %v2796_v33 }
 0x9c4   :  { %v3712_v37 = vpop.eup %3711 }
 0x9c5   :  { %v1200_v39 = vadd.f32 1.0, %v3712_v37 }
 0x9c7   :  { %3713 = vrcp.f32 %v1200_v39 }
 0x9d1   :  { %v3714_v12 = vpop.eup %3713 }
 0x9d2   :  { %v1206_v43 = vmul.f32 %v3714_v12, %v1204_v40  ;;  %v1213_v1 = vsub.f32 1.0, %v3714_v12 }
 0x9d4   :  { %1208 = vrot.lane.b32.xlu1 %v1206_v43, %s3799_s27 }
 0x9d8   :  { %1219 = vrot.lane.b32.xlu1 %v4116_v19, %s3798_s4 }
 0xa46   :  { %v1209_v16 = vpop.permute.xlu1 %1208 }
 0xa47   :  { %v1211_v44 = vadd.f32 %v1209_v16, %v1190_v25 }
 0xa49   :  { %3715 = vtanh.f32 %v1211_v44 }
 0xa4a   :  { %v1220_v59 = vpop.permute.xlu1 %1219 }
 0xa4b   :  { %v1222_v4 = vmul.f32 %v3714_v12, %v1220_v59 }
 0xa53   :  { %v3716_v38 = vpop.eup %3715 }
 0xa54   :  { %1215 = vrot.lane.b32.xlu0 %v3716_v38, %s3800_s28 }
 0xac6   :  { %v1216_v28 = vpop.permute.xlu0 %1215 }
 0xac7   :  { %v1218_v47 = vmul.f32 %v1216_v28, %v1213_v1 }
 0xac9   :  { %v1223_v50 = vadd.f32 %v1222_v4, %v1218_v47 }
 0xacb   :  { %1225 = vrot.lane.b32.xlu0 %v1223_v50, %s3800_s28 }
 0xb3d   :  { %v1226_v53 = vpop.permute.xlu0 %1225 }
 0xb3e   :  { %1228 = vst.msk [vmem:[#allocation2] sm:$0x3] %vm147_vm1, %v1226_v53  ;;  %3185 = vmatmul.mubr.msk.f32.vlgmr.msra.gmra.mrb[6].mxu0 %vm53_vm0, %v1226_v53 }
 0xb3f   :  { %3522 = vmatpush3.bf16.msra.mxu0 %v4185_v48  ;;  %3219 = vmatprep.mubr.msk.f32.mxu0 %vm3794_vm2, %v3795_v17 }
 0xb40   :  { %3523 = vmatprep.subr.bf16.mxu0 %v3793_v13 }
 0xb43   :  { %3525 = vmatpush3.bf16.msra.mxu0 %v4191_v51 }
 0xb44   :  { %3526 = vmatprep.subr.bf16.mxu0 %v3793_v13 }
 0xb45   :  { %v4305_v19 = vld [vmem:[#allocation2] sm:$0x3] }
 0xb46   :  { %3231 = vmatmul.mubr.msk.f32.vlgmr.msra.gmra.mrb[12].mxu1 %vm53_vm0, %v4305_v19 }
 0xb47   :  { %3553 = vmatpush3.bf16.msra.mxu1 %v3945_v22  ;;  %3528 = vmatpush3.bf16.msra.mxu0 %v4201_v57 }
 0xb48   :  { %3555 = vmatprep.subr.bf16.mxu1 %v3950_v24  ;;  %3529 = vmatprep.subr.bf16.mxu0 %v3793_v13 }
 0xb4b   :  { %3557 = vmatpush3.bf16.msra.mxu1 %v3950_v24  ;;  %3531 = vmatpush3.bf16.msra.mxu0 %v4211_v61 }
 0xb4c   :  { %3532 = vmatprep.subr.bf16.mxu0 %v3793_v13  ;;  %3558 = vmatprep.subr.bf16.mxu1 %v3793_v13 }
 0xb4f   :  { %3534 = vmatpush3.bf16.msra.mxu0 %v4230_v21 }
 0xb50   :  { %3535 = vmatprep.subr.bf16.mxu0 %v3793_v13 }
 0xb53   :  { %3537 = vmatpush3.bf16.msra.mxu0 %v4240_v26 }
 0xb54   :  { %3538 = vmatprep.subr.bf16.mxu0 %v3793_v13 }
 0xb57   :  { %3540 = vmatpush3.bf16.msra.mxu0 %v4250_v31 }
 0xb58   :  { %3541 = vmatprep.subr.bf16.mxu0 %v3793_v13 }
 0xb5b   :  { %3543 = vmatpush3.bf16.msra.mxu0 %v4260_v34 }
 0xb5c   :  { %3576 = vmatprep.subr.bf16.mxu0 %v3793_v13 }
 0xc11   :  { %v1308_v22 = vpop.f32.mrb[6].mxu0 }
 0xc12   :  { %v4326_v24 = vadd.f32 %v4127_v20, %v1308_v22  ;;  %v3186_v48 = vpop.f32.mrb[7].mxu0 }
 0xc14   :  { %v1312_v51 = vsel %vm661_vm8, %v4326_v24, -inf }
 0xc15   :  { %1313 = vmax.xlane.f32.xlu1 %v1312_v51 }
 0xc19   :  { %v1541_v57 = vpop.f32.mrb[12].mxu1 }
 0xc1a   :  { %v4331_v61 = vadd.f32 %v3966_v35, %v1541_v57  ;;  %v3232_v21 = vpop.f32.mrb[13].mxu1 }
 0xc1c   :  { %v1552_v26 = vrot.slane %v4331_v61, %v3968_v36 }
 0xc1e   :  { %v1553_v31 = vcombine.high %v1552_v26, %v1552_v26  ;;  %v1560_v34 = vrot.slane %v1552_v26, %v3968_v36 }
 0xc20   :  { %v1567_v6 = vrot.slane %v1553_v31, %v3968_v36  ;;  %v1573_v20 = vrot.slane %v1560_v34, %v3975_v41 }
 0xc22   :  { %v1577_v42 = vrot.slane %v1567_v6, %v3975_v41  ;;  %v1580_v58 = vadd.f32 %v1573_v20, %v3980_v46 }
 0xc24   :  { %v1581_v60 = vadd.f32 %v1577_v42, %v3984_v49  ;;  %3717 = vtanh.f32 %v1580_v58 }
 0xc26   :  { %3719 = vtanh.f32 %v1581_v60 }
 0xc2e   :  { %v3718_v35 = vpop.eup %3717 }
 0xc2f   :  { %3241 = vmatprep.mubr.msk.f32.mxu1 %vm53_vm0, %v3718_v35  ;;  %v4362_v35 = vld [vmem:[%s4743_s0] sm:$0xff] }
 0xc30   :  { %v3720_v63 = vpop.eup %3719 }
 0xc31   :  { %3242 = vmatmul.mubr.msk.f32.vlgmr.msra.gmra.mrb[14].mxu1 %vm53_vm0, %v3720_v63 }
 0xc32   :  { %3268 = vmatprep.mubr.msk.f32.mxu1 %vm3794_vm2, %v3795_v17 }
 0xca2   :  { %v4345_v18 = vpop.xlane.xlu1 %1313 }
 0xca3   :  { %vm1352_vm12 = vcmp.eq.f32.partialorder %v4326_v24, %v4345_v18 }
 0xca4   :  { %v1353_v46 = vsel %vm1352_vm12, %v4162_v52, 128 }
 0xca5   :  { %v1354_v49 = vsel %vm661_vm8, %v1353_v46, 2147483647 }
 0xca6   :  { %v1356_v3 = vshra.s32 %v1354_v49, 16  ;;  %v1355_v51 = vand.u32 65535, %v1354_v49 }
 0xca8   :  { %v1358_v5 = vcvt.s32.f32 %v1356_v3  ;;  %v1357_v26 = vcvt.s32.f32 %v1355_v51  ;;  %v1759_v51 = vld [vmem:[%s4752_s9 + $0x50] sm:$0xff] }
 0xcaa   :  { %1359 = vmin.xlane.f32.xlu0 %v1358_v5 }
 0xd04   :  { %v3243_v0 = vpop.f32.mrb[14].mxu1 }
 0xd05   :  { %v1673_v7 = vadd.f32 %v3243_v0, %v3991_v54  ;;  %v1667_v8 = vpop.f32.mrb[15].mxu1 }
 0xd06   :  { %v1668_v9 = vadd.f32 %v3991_v54, %v1667_v8 }
 0xd07   :  { %v1683_v10 = vsel %vm373_vm3, %v1673_v7, -inf }
 0xd08   :  { %v1684_v14 = vrot.slane %v1683_v10, 4  ;;  %v1676_v11 = vsel %vm373_vm3, %v1668_v9, -inf }
 0xd09   :  { %v1677_v2 = vrot.slane %v1676_v11, 4 }
 0xd0a   :  { %v1685_v15 = vmax.f32 %v1683_v10, %v1684_v14  ;;  %v4371_v14 = vld [vmem:[%s4743_s0 + $0x8] sm:$0xff] }
 0xd0b   :  { %v1678_v62 = vmax.f32 %v1676_v11, %v1677_v2 }
 0xd0c   :  { %v1686_v45 = vrot.slane %v1685_v15, 2 }
 0xd0d   :  { %v1679_v29 = vrot.slane %v1678_v62, 2 }
 0xd0e   :  { %v1687_v25 = vmax.f32 %v1685_v15, %v1686_v45 }
 0xd0f   :  { %v1680_v27 = vmax.f32 %v1678_v62, %v1679_v29 }
 0xd10   :  { %v1688_v30 = vrot.slane %v1687_v25, 1 }
 0xd11   :  { %v1681_v32 = vrot.slane %v1680_v27, 1 }
 0xd12   :  { %v1689_v33 = vmax.f32 %v1687_v25, %v1688_v30  ;;  %v1750_v30 = vld [vmem:[%s4752_s9 + $0x8] sm:$0xff] }
 0xd13   :  { %v1682_v37 = vmax.f32 %v1680_v27, %v1681_v32  ;;  %v1749_v27 = vld [vmem:[%s4752_s9] sm:$0xff]  ;;  %v1751_v32 = vld [vmem:[%s4752_s9 + $0x10] sm:$0xff] }
 0xd14   :  { %v1691_v39 = vsub.f32 %v1673_v7, %v1689_v33 }
 0xd15   :  { %v1690_v12 = vsub.f32 %v1668_v9, %v1682_v37  ;;  %v4386_v37 = vpack.c.bf16 %v1750_v30, %v1749_v27  ;;  %v2110_v27 = vld [vmem:[%s4748_s5 + $0x8] sm:$0xff] }
 0xd16   :  { %v1694_v40 = vmul.f32 1.442695, %v1691_v39  ;;  %v1752_v39 = vld [vmem:[%s4752_s9 + $0x18] sm:$0xff] }
 0xd17   :  { %v1692_v54 = vmul.f32 1.442695, %v1690_v12  ;;  %3560 = vmatpush3.bf16.msra.mxu1 %v4386_v37 }
 0xd18   :  { %3721 = vpow2.f32 %v1694_v40  ;;  %3561 = vmatprep.subr.bf16.mxu1 %v3793_v13 }
 0xd19   :  { %3723 = vpow2.f32 %v1692_v54  ;;  %v4392_v54 = vpack.c.bf16 %v1752_v39, %v1751_v32  ;;  %v2111_v32 = vld [vmem:[%s4748_s5 + $0x10] sm:$0xff] }
 0xd1b   :  { %3563 = vmatpush3.bf16.msra.mxu1 %v4392_v54 }
 0xd1c   :  { %3564 = vmatprep.subr.bf16.mxu1 %v3793_v13 }
 0xd22   :  { %v3722_v43 = vpop.eup %3721 }
 0xd23   :  { %v3724_v16 = vpop.eup %3723  ;;  %v1703_v59 = vsel %vm373_vm3, %v3722_v43, 0.0 }
 0xd24   :  { %v1696_v44 = vsel %vm373_vm3, %v3724_v16, 0.0  ;;  %v1704_v28 = vrot.slane %v1703_v59, 4 }
 0xd25   :  { %v1697_v38 = vrot.slane %v1696_v44, 4 }
 0xd26   :  { %v1705_v50 = vadd.f32 %v1704_v28, %v1703_v59  ;;  %v1755_v28 = vld [vmem:[%s4752_s9 + $0x30] sm:$0xff] }
 0xd27   :  { %v1698_v1 = vadd.f32 %v1697_v38, %v1696_v44 }
 0xd28   :  { %v1706_v48 = vrot.slane %v1705_v50, 2 }
 0xd29   :  { %v1699_v4 = vrot.slane %v1698_v1, 2 }
 0xd2a   :  { %v1707_v57 = vadd.f32 %v1706_v48, %v1705_v50 }
 0xd2b   :  { %v1700_v47 = vadd.f32 %v1699_v4, %v1698_v1  ;;  %v1756_v4 = vld [vmem:[%s4752_s9 + $0x38] sm:$0xff] }
 0xd2c   :  { %v1708_v34 = vrot.slane %v1707_v57, 1  ;;  %v4414_v50 = vpack.c.bf16 %v1756_v4, %v1755_v28  ;;  %v2232_v4 = vld [vmem:[%s4750_s7] sm:$0xff] }
 0xd2d   :  { %v1701_v53 = vrot.slane %v1700_v47, 1 }
 0xd2e   :  { %v1709_v42 = vadd.f32 %v1708_v34, %v1707_v57 }
 0xd2f   :  { %v1702_v22 = vadd.f32 %v1701_v53, %v1700_v47  ;;  %v1757_v53 = vld [vmem:[%s4752_s9 + $0x40] sm:$0xff] }
 0xd31   :  { %3725 = vrcp.f32 %v1702_v22  ;;  %v1758_v22 = vld [vmem:[%s4752_s9 + $0x48] sm:$0xff] }
 0xd32   :  { %3727 = vrcp.f32 %v1709_v42  ;;  %v4427_v48 = vpack.c.bf16 %v1758_v22, %v1757_v53  ;;  %v2234_v53 = vld [vmem:[%s4750_s7 + $0x10] sm:$0xff] }
 0xd37   :  { %v1360_v21 = vpop.xlane.xlu0 %1359 }
 0xd38   :  { %vm1361_vm13 = vcmp.eq.f32.partialorder %v1358_v5, %v1360_v21  ;;  %v1366_v49 = vcvt.f32.s32 %v1360_v21 }
 0xd39   :  { %v1362_v31 = vsel %vm1361_vm13, %v1357_v26, inf }
 0xd3a   :  { %1363 = vmin.xlane.f32.xlu0 %v1362_v31  ;;  %v1367_v0 = vshll.u32 %v1366_v49, 16 }
 0xd3b   :  { %v3726_v6 = vpop.eup %3725 }
 0xd3c   :  { %v1712_v20 = vmul.f32 %v3726_v6, %v3724_v16  ;;  %v3728_v58 = vpop.eup %3727  ;;  %v1754_v16 = vld [vmem:[%s4752_s9 + $0x28] sm:$0xff] }
 0xd3d   :  { %v1713_v60 = vmul.f32 %v3728_v58, %v3722_v43  ;;  %v1753_v43 = vld [vmem:[%s4752_s9 + $0x20] sm:$0xff] }
 0xd3e   :  { %1718 = vperm.xlu1 %3680, %v1712_v20   ;;  %v4402_v1 = vpack.c.bf16 %v1754_v16, %v1753_v43  ;;  %v4449_v20 = vld [vmem:[%s4753_s10] ss:$0 sm:$0xff] }
 0xd40   :  { %3566 = vmatpush3.bf16.msra.mxu1 %v4402_v1 }
 0xd41   :  { %3567 = vmatprep.subr.bf16.mxu1 %v3793_v13 }
 0xd44   :  { %3569 = vmatpush3.bf16.msra.mxu1 %v4414_v50 }
 0xd45   :  { %3570 = vmatprep.subr.bf16.mxu1 %v3793_v13 }
 0xd48   :  { %3572 = vmatpush3.bf16.msra.mxu1 %v4427_v48 }
 0xd49   :  { %3573 = vmatprep.subr.bf16.mxu1 %v3793_v13 }
 0xd50   :  { %1723 = vperm.xlu0 %3679, %v1713_v60  }
 0xd54   :  { %1851 = vrot.lane.b32.xlu0 %v4331_v61, %s3798_s4 }
 0xdbd   :  { %v1719_v63 = vpop.permute.xlu1 %1718 }
 0xdbe   :  { %v1726_v46 = vmul.f32 %v1719_v63, %v4362_v35 }
 0xdc0   :  { %v1728_v3 = vsel %vm53_vm0, %v1726_v46, 0.0 }
 0xdc1   :  { %v1729_v8 = vrot.slane %v1728_v3, 4 }
 0xdc3   :  { %v1730_v10 = vadd.f32 %v1729_v8, %v1728_v3 }
 0xdc5   :  { %v1731_v15 = vrot.slane %v1730_v10, 2 }
 0xdc7   :  { %v1364_v5 = vpop.xlane.xlu0 %1363  ;;  %v1732_v29 = vadd.f32 %v1731_v15, %v1730_v10  ;;  %v1879_v15 = vld [vmem:[%s4754_s11 + $0x10] sm:$0xff] }
 0xdc8   :  { %v1365_v7 = vcvt.f32.s32 %v1364_v5 }
 0xdc9   :  { %v1733_v12 = vrot.slane %v1732_v29, 1 }
 0xdca   :  { %v1368_v9 = vadd.s32 %v1367_v0, %v1365_v7 }
 0xdcb   :  { %v1734_v38 = vadd.f32 %v1733_v12, %v1732_v29 }
 0xdcc   :  { %vm1369_vm14 = vcmp.eq.s32.totalorder %v4162_v52, %v1368_v9 }
 0xdcd   :  { %3220 = vmatmul.mubr.msk.f32.vlgmr.msra.gmra.mrb[8].mxu0 %vm1369_vm14, %v3801_v56 }
 0xdce   :  { %3279 = vmatprep.mubr.msk.f32.mxu0 %vm3794_vm2, %v3795_v17 }
 0xdcf   :  { %v1724_v11 = vpop.permute.xlu0 %1723 }
 0xdd0   :  { %v1727_v2 = vmul.f32 %v1724_v11, %v4371_v14  ;;  %v1877_v11 = vld [vmem:[%s4754_s11] sm:$0xff] }
 0xdd2   :  { %v1735_v62 = vsel %vm53_vm0, %v1727_v2, 0.0  ;;  %v1878_v2 = vld [vmem:[%s4754_s11 + $0x8] sm:$0xff] }
 0xdd3   :  { %v1736_v45 = vrot.slane %v1735_v62, 4  ;;  %v1852_v7 = vpop.permute.xlu0 %1851 }
 0xdd5   :  { %v1737_v25 = vadd.f32 %v1736_v45, %v1735_v62  ;;  %v4464_v62 = vpack.c.bf16 %v1878_v2, %v1877_v11 }
 0xdd7   :  { %v1738_v33 = vrot.slane %v1737_v25, 2  ;;  %3578 = vmatpush3.bf16.msra.mxu0 %v4464_v62 }
 0xdd8   :  { %3579 = vmatprep.subr.bf16.mxu0 %v3793_v13 }
 0xdd9   :  { %v1739_v40 = vadd.f32 %v1738_v33, %v1737_v25  ;;  %v2109_v25 = vld [vmem:[%s4748_s5] sm:$0xff]  ;;  %v2112_v33 = vld [vmem:[%s4748_s5 + $0x18] sm:$0xff] }
 0xdda   :  { %v3607_v30 = vpack.c.bf16 %v2110_v27, %v2109_v25  ;;  %v3610_v39 = vpack.c.bf16 %v2112_v33, %v2111_v32  ;;  %v2023_v25 = vld [vmem:[%s4745_s2 + $0x18] sm:$0xff]  ;;  %v2025_v32 = vld [vmem:[%s4745_s2 + $0x28] sm:$0xff] }
 0xddb   :  { %v1740_v44 = vrot.slane %v1739_v40, 1 }
 0xddd   :  { %v1741_v59 = vadd.f32 %v1740_v44, %v1739_v40 }
 0xddf   :  { %v1744_v47 = vsel %vm442_vm5, %v1741_v59, %v1734_v38 }
 0xde0   :  { %1745 = vrot.lane.b32.xlu1 %v1744_v47, %s3799_s27  ;;  %v2233_v47 = vld [vmem:[%s4750_s7 + $0x8] sm:$0xff] }
 0xde1   :  { %v3612_v22 = vpack.c.bf16 %v2233_v47, %v2232_v4 }
 0xde4   :  { %1841 = vrot.lane.b32.xlu1 %v4331_v61, %s3800_s28  ;;  %v1760_v61 = vld [vmem:[%s4752_s9 + $0x58] sm:$0xff] }
 0xde5   :  { %v4436_v57 = vpack.c.bf16 %v1760_v61, %v1759_v51  ;;  %v2235_v51 = vld [vmem:[%s4750_s7 + $0x18] sm:$0xff] }
 0xde6   :  { %v3616_v61 = vpack.c.bf16 %v2235_v51, %v2234_v53 }
 0xde7   :  { %3575 = vmatpush3.bf16.msra.mxu1 %v4436_v57 }
 0xde8   :  { %3606 = vmatprep.subr.bf16.mxu1 %v3793_v13 }
 0xe52   :  { %v1746_v31 = vpop.permute.xlu1 %1745 }
 0xe56   :  { %v1842_v63 = vpop.permute.xlu1 %1841 }
 0xea0   :  { %v1454_v21 = vpop.f32.mrb[8].mxu0 }
 0xea1   :  { %1458 = vst.msk [vmem:[#allocation3] sm:$0x3] %vm154_vm4, %v1454_v21  ;;  %v3221_v26 = vpop.f32.mrb[9].mxu0  ;;  %v4514_v21 = vld [vmem:[%s4755_s12] ss:$0 sm:$0xff] }
 0xea8   :  { %v1460_v34 = vld [vmem:[#allocation3] sm:$0x3] }
 0xea9   :  { %v1748_v6 = vsel %vm447_vm6, %v1460_v34, %v1746_v31 }
 0xeaa   :  { %3269 = vmatmul.mubr.msk.f32.vlgmr.msra.gmra.mrb[16].mxu1 %vm468_vm7, %v1748_v6 }
 0xeab   :  { %3325 = vmatprep.mubr.msk.f32.mxu1 %vm3794_vm2, %v3795_v17  ;;  %3608 = vmatpush3.bf16.msra.mxu1 %v3607_v30  ;;  %v2024_v30 = vld [vmem:[%s4745_s2 + $0x20] sm:$0xff] }
 0xeac   :  { %3609 = vmatprep.subr.bf16.mxu1 %v3793_v13  ;;  %v4584_v33 = vpack.c.bf16 %v2025_v32, %v2024_v30 }
 0xeaf   :  { %3611 = vmatpush3.bf16.msra.mxu1 %v3610_v39  ;;  %v2026_v39 = vld [vmem:[%s4745_s2 + $0x30] sm:$0xff] }
 0xeb0   :  { %3613 = vmatprep.subr.bf16.mxu1 %v3612_v22 }
 0xf7d   :  { %v1837_v42 = vpop.f32.mrb[16].mxu1 }
 0xf7e   :  { %v1838_v58 = vadd.f32 %v4449_v20, %v1837_v42  ;;  %v3270_v60 = vpop.f32.mrb[17].mxu1  ;;  %v2817_v42 = vld [vmem:[%s4749_s6] ss:$0 sm:$0xff] }
 0xf80   :  { %v1844_v46 = vadd.f32 %v1842_v63, %v1838_v58 }
 0xf82   :  { %v2810_v49 = vmul.f32 -1.442695, %v1844_v46 }
 0xf84   :  { %3729 = vpow2.f32 %v2810_v49 }
 0xf8e   :  { %v3730_v3 = vpop.eup %3729 }
 0xf8f   :  { %v1848_v5 = vadd.f32 1.0, %v3730_v3 }
 0xf91   :  { %3731 = vrcp.f32 %v1848_v5 }
 0xf9b   :  { %v3732_v0 = vpop.eup %3731 }
 0xf9c   :  { %v1854_v8 = vmul.f32 %v3732_v0, %v1852_v7  ;;  %v1861_v40 = vsub.f32 1.0, %v3732_v0  ;;  %v2216_v7 = vld [vmem:[#allocation4] sm:$0xff] }
 0xf9e   :  { %1856 = vrot.lane.b32.xlu1 %v1854_v8, %s3799_s27 }
 0xfa2   :  { %1867 = vrot.lane.b32.xlu1 %v4305_v19, %s3798_s4  ;;  %v1880_v19 = vld [vmem:[%s4754_s11 + $0x18] sm:$0xff] }
 0xfa3   :  { %v4470_v45 = vpack.c.bf16 %v1880_v19, %v1879_v15  ;;  %v2022_v19 = vld [vmem:[%s4745_s2 + $0x10] sm:$0xff] }
 0xfa4   :  { %v4574_v27 = vpack.c.bf16 %v2023_v25, %v2022_v19 }
 0xfa5   :  { %3581 = vmatpush3.bf16.msra.mxu0 %v4470_v45 }
 0xfa6   :  { %3582 = vmatprep.subr.bf16.mxu0 %v3793_v13 }
0x1010   :  { %v1857_v9 = vpop.permute.xlu1 %1856 }
0x1011   :  { %v1859_v10 = vadd.f32 %v1857_v9, %v1838_v58 }
0x1013   :  { %3733 = vtanh.f32 %v1859_v10  ;;  %v2217_v10 = vld [vmem:[#allocation4 + $0x8] sm:$0xff] }
0x1014   :  { %v1868_v12 = vpop.permute.xlu1 %1867 }
0x1015   :  { %v1870_v16 = vmul.f32 %v3732_v0, %v1868_v12  ;;  %v2027_v12 = vld [vmem:[%s4745_s2 + $0x38] sm:$0xff] }
0x101d   :  { %v3734_v29 = vpop.eup %3733 }
0x101e   :  { %1863 = vrot.lane.b32.xlu0 %v3734_v29, %s3800_s28 }
0x1090   :  { %v1864_v43 = vpop.permute.xlu0 %1863 }
0x1091   :  { %v1866_v44 = vmul.f32 %v1864_v43, %v1861_v40  ;;  %v4594_v40 = vpack.c.bf16 %v2027_v12, %v2026_v39  ;;  %v2819_v43 = vld [vmem:[#allocation5] ss:$0 sm:$0xff] }
0x1093   :  { %v1871_v38 = vadd.f32 %v1870_v16, %v1866_v44 }
0x1095   :  { %1873 = vrot.lane.b32.xlu0 %v1871_v38, %s3800_s28 }
0x1107   :  { %v1874_v59 = vpop.permute.xlu0 %1873 }
0x1108   :  { %1876 = vst.msk [vmem:[#allocation2] sm:$0x3] %vm147_vm1, %v1874_v59  ;;  %3280 = vmatmul.mubr.msk.f32.vlgmr.msra.gmra.mrb[10].mxu0 %vm53_vm0, %v1874_v59 }
0x1109   :  { %3314 = vmatprep.mubr.msk.f32.mxu0 %vm3794_vm2, %v3795_v17 }
0x110f   :  { %v4494_v28 = vld [vmem:[#allocation2] sm:$0x3] }
0x1110   :  { %3326 = vmatmul.mubr.msk.f32.vlgmr.msra.gmra.mrb[18].mxu1 %vm53_vm0, %v4494_v28 }
0x1111   :  { %3615 = vmatpush3.bf16.msra.mxu1 %v3612_v22 }
0x1112   :  { %3617 = vmatprep.subr.bf16.mxu1 %v3616_v61 }
0x1115   :  { %3619 = vmatpush3.bf16.msra.mxu1 %v3616_v61 }
0x1116   :  { %3620 = vmatprep.subr.bf16.mxu1 %v3793_v13 }
0x11db   :  { %v1956_v26 = vpop.f32.mrb[10].mxu0 }
0x11dc   :  { %v4517_v31 = vadd.f32 %v4514_v21, %v1956_v26  ;;  %v3281_v34 = vpop.f32.mrb[11].mxu0 }
0x11de   :  { %v1960_v6 = vsel %vm661_vm8, %v4517_v31, -inf }
0x11df   :  { %1961 = vmax.xlane.f32.xlu1 %v1960_v6 }
0x11e3   :  { %v2189_v58 = vpop.f32.mrb[18].mxu1 }
0x11e4   :  { %v4524_v60 = vadd.f32 %v2817_v42, %v2189_v58  ;;  %v3327_v63 = vpop.f32.mrb[19].mxu1 }
0x11e6   :  { %v2200_v46 = vrot.slane %v4524_v60, %v3968_v36 }
0x11e8   :  { %v2201_v49 = vcombine.high %v2200_v46, %v2200_v46  ;;  %v2208_v3 = vrot.slane %v2200_v46, %v3968_v36 }
0x11ea   :  { %v2215_v5 = vrot.slane %v2201_v49, %v3968_v36  ;;  %v2221_v0 = vrot.slane %v2208_v3, %v3975_v41 }
0x11ec   :  { %v2225_v8 = vrot.slane %v2215_v5, %v3975_v41  ;;  %v2228_v9 = vadd.f32 %v2221_v0, %v2216_v7 }
0x11ee   :  { %v2229_v11 = vadd.f32 %v2225_v8, %v2217_v10  ;;  %3735 = vtanh.f32 %v2228_v9 }
0x11f0   :  { %3737 = vtanh.f32 %v2229_v11 }
0x11f8   :  { %v3736_v2 = vpop.eup %3735 }
0x11f9   :  { %3336 = vmatprep.mubr.msk.f32.mxu1 %vm53_vm0, %v3736_v2 }
0x11fa   :  { %v3738_v15 = vpop.eup %3737 }
0x11fb   :  { %3337 = vmatmul.mubr.msk.f32.vlgmr.msra.gmra.mrb[20].mxu1 %vm53_vm0, %v3738_v15 }
0x11fc   :  { %3622 = vmatpush3.bf16.msra.mxu1 %v4386_v37  ;;  %3363 = vmatprep.mubr.msk.f32.mxu1 %vm3794_vm2, %v3795_v17 }
0x11fd   :  { %3623 = vmatprep.subr.bf16.mxu1 %v3793_v13 }
0x1200   :  { %3625 = vmatpush3.bf16.msra.mxu1 %v4392_v54 }
0x1201   :  { %3626 = vmatprep.subr.bf16.mxu1 %v3793_v13 }
0x1204   :  { %3628 = vmatpush3.bf16.msra.mxu1 %v4402_v1 }
0x1205   :  { %3629 = vmatprep.subr.bf16.mxu1 %v3793_v13 }
0x1208   :  { %3631 = vmatpush3.bf16.msra.mxu1 %v4414_v50 }
0x1209   :  { %3632 = vmatprep.subr.bf16.mxu1 %v3793_v13 }
0x120c   :  { %3634 = vmatpush3.bf16.msra.mxu1 %v4427_v48  ;;  %v2020_v48 = vld [vmem:[%s4745_s2] sm:$0xff] }
0x120d   :  { %3635 = vmatprep.subr.bf16.mxu1 %v3793_v13 }
0x1210   :  { %3637 = vmatpush3.bf16.msra.mxu1 %v4436_v57  ;;  %v2021_v57 = vld [vmem:[%s4745_s2 + $0x8] sm:$0xff] }
0x1211   :  { %v4568_v29 = vpack.c.bf16 %v2021_v57, %v2020_v48 }
0x1213   :  { %3584 = vmatpush3.bf16.msra.mxu0 %v4568_v29 }
0x1214   :  { %3585 = vmatprep.subr.bf16.mxu0 %v3793_v13 }
0x1217   :  { %3587 = vmatpush3.bf16.msra.mxu0 %v4574_v27 }
0x1218   :  { %3588 = vmatprep.subr.bf16.mxu0 %v3793_v13 }
0x121b   :  { %3590 = vmatpush3.bf16.msra.mxu0 %v4584_v33 }
0x121c   :  { %3591 = vmatprep.subr.bf16.mxu0 %v3793_v13 }
0x121f   :  { %3593 = vmatpush3.bf16.msra.mxu0 %v4594_v40 }
0x1220   :  { %3594 = vmatprep.subr.bf16.mxu0 %v3793_v13 }
0x126c   :  { %v4547_v41 = vpop.xlane.xlu1 %1961 }
0x126d   :  { %vm2000_vm15 = vcmp.eq.f32.partialorder %v4517_v31, %v4547_v41 }
0x126e   :  { %v2001_v37 = vsel %vm2000_vm15, %v4162_v52, 128 }
0x126f   :  { %v4553_v54 = vsel %vm661_vm8, %v2001_v37, 2147483647 }
0x1270   :  { %v2004_v1 = vshra.s32 %v4553_v54, 16  ;;  %v2003_v32 = vand.u32 65535, %v4553_v54 }
0x1272   :  { %v4556_v50 = vcvt.s32.f32 %v2004_v1 }
0x1274   :  { %2007 = vmin.xlane.f32.xlu0 %v4556_v50 }
0x12ce   :  { %v3338_v16 = vpop.f32.mrb[20].mxu1 }
0x12cf   :  { %v2321_v44 = vadd.f32 %v3338_v16, %v2819_v43  ;;  %v2315_v38 = vpop.f32.mrb[21].mxu1 }
0x12d0   :  { %v2316_v59 = vadd.f32 %v2819_v43, %v2315_v38  ;;  %v2005_v43 = vcvt.s32.f32 %v2003_v32 }
0x12d1   :  { %v2331_v4 = vsel %vm373_vm3, %v2321_v44, -inf }
0x12d2   :  { %v2332_v47 = vrot.slane %v2331_v4, 4  ;;  %v2324_v53 = vsel %vm373_vm3, %v2316_v59, -inf }
0x12d3   :  { %v2325_v22 = vrot.slane %v2324_v53, 4 }
0x12d4   :  { %v2333_v51 = vmax.f32 %v2331_v4, %v2332_v47  ;;  %v2029_v4 = vld [vmem:[%s4745_s2 + $0x48] sm:$0xff] }
0x12d5   :  { %v2326_v61 = vmax.f32 %v2324_v53, %v2325_v22  ;;  %v2031_v22 = vld [vmem:[%s4745_s2 + $0x58] sm:$0xff] }
0x12d6   :  { %v2334_v26 = vrot.slane %v2333_v51, 2 }
0x12d7   :  { %v2327_v34 = vrot.slane %v2326_v61, 2 }
0x12d8   :  { %v2335_v6 = vmax.f32 %v2333_v51, %v2334_v26  ;;  %v2033_v26 = vld [vmem:[%s4745_s2 + $0x68] sm:$0xff] }
0x12d9   :  { %v2328_v42 = vmax.f32 %v2326_v61, %v2327_v34  ;;  %v2032_v61 = vld [vmem:[%s4745_s2 + $0x60] sm:$0xff] }
0x12da   :  { %v2336_v58 = vrot.slane %v2335_v6, 1  ;;  %v4631_v34 = vpack.c.bf16 %v2033_v26, %v2032_v61 }
0x12db   :  { %v2329_v63 = vrot.slane %v2328_v42, 1 }
0x12dc   :  { %v2337_v46 = vmax.f32 %v2335_v6, %v2336_v58  ;;  %v2034_v6 = vld [vmem:[%s4745_s2 + $0x70] sm:$0xff] }
0x12dd   :  { %v2330_v49 = vmax.f32 %v2328_v42, %v2329_v63  ;;  %v2035_v42 = vld [vmem:[%s4745_s2 + $0x78] sm:$0xff] }
0x12de   :  { %v2339_v3 = vsub.f32 %v2321_v44, %v2337_v46  ;;  %v4641_v58 = vpack.c.bf16 %v2035_v42, %v2034_v6 }
0x12df   :  { %v2338_v5 = vsub.f32 %v2316_v59, %v2330_v49  ;;  %v2028_v59 = vld [vmem:[%s4745_s2 + $0x40] sm:$0xff] }
0x12e0   :  { %v2342_v0 = vmul.f32 1.442695, %v2339_v3  ;;  %v4611_v53 = vpack.c.bf16 %v2029_v4, %v2028_v59 }
0x12e1   :  { %v2340_v7 = vmul.f32 1.442695, %v2338_v5 }
0x12e2   :  { %3739 = vpow2.f32 %v2342_v0  ;;  %3596 = vmatpush3.bf16.msra.mxu0 %v4611_v53 }
0x12e3   :  { %3741 = vpow2.f32 %v2340_v7  ;;  %3597 = vmatprep.subr.bf16.mxu0 %v3793_v13 }
0x12ec   :  { %v3740_v8 = vpop.eup %3739 }
0x12ed   :  { %v3742_v9 = vpop.eup %3741  ;;  %v2351_v2 = vsel %vm373_vm3, %v3740_v8, 0.0 }
0x12ee   :  { %v2344_v10 = vsel %vm373_vm3, %v3742_v9, 0.0  ;;  %v2352_v37 = vrot.slane %v2351_v2, 4 }
0x12ef   :  { %v2345_v11 = vrot.slane %v2344_v10, 4 }
0x12f0   :  { %v2353_v57 = vadd.f32 %v2352_v37, %v2351_v2 }
0x12f1   :  { %v2346_v15 = vadd.f32 %v2345_v11, %v2344_v10 }
0x12f2   :  { %v2354_v30 = vrot.slane %v2353_v57, 2 }
0x12f3   :  { %v2347_v1 = vrot.slane %v2346_v15, 2 }
0x12f4   :  { %v2355_v39 = vadd.f32 %v2354_v30, %v2353_v57 }
0x12f5   :  { %v2348_v48 = vadd.f32 %v2347_v1, %v2346_v15 }
0x12f6   :  { %v2356_v44 = vrot.slane %v2355_v39, 1 }
0x12f7   :  { %v2349_v19 = vrot.slane %v2348_v48, 1 }
0x12f8   :  { %v2357_v54 = vadd.f32 %v2356_v44, %v2355_v39 }
0x12f9   :  { %v2350_v25 = vadd.f32 %v2349_v19, %v2348_v48 }
0x12fb   :  { %3743 = vrcp.f32 %v2350_v25 }
0x12fc   :  { %3745 = vrcp.f32 %v2357_v54 }
0x1301   :  { %v2008_v12 = vpop.xlane.xlu0 %2007 }
0x1302   :  { %vm2009_vm9 = vcmp.eq.f32.partialorder %v4556_v50, %v2008_v12  ;;  %v2030_v50 = vld [vmem:[%s4745_s2 + $0x50] sm:$0xff]  ;;  %v2014_v5 = vcvt.f32.s32 %v2008_v12  ;;  %s3802_s2 = smov [#allocation6]  }
0x1303   :  { %v2010_v16 = vsel %vm2009_vm9, %v2005_v43, inf  ;;  %v4621_v51 = vpack.c.bf16 %v2031_v22, %v2030_v50 }
0x1304   :  { %2011 = vmin.xlane.f32.xlu0 %v2010_v16 }
0x1305   :  { %v3744_v38 = vpop.eup %3743  ;;  %3599 = vmatpush3.bf16.msra.mxu0 %v4621_v51 }
0x1306   :  { %v2360_v47 = vmul.f32 %v3744_v38, %v3742_v9  ;;  %3600 = vmatprep.subr.bf16.mxu0 %v3793_v13  ;;  %v3746_v63 = vpop.eup %3745  ;;  %v2015_v9 = vshll.u32 %v2014_v5, 16 }
0x1307   :  { %v2361_v46 = vmul.f32 %v3746_v63, %v3740_v8 }
0x1308   :  { %2366 = vperm.xlu1 %3680, %v2360_v47  }
0x1309   :  { %3602 = vmatpush3.bf16.msra.mxu0 %v4631_v34 }
0x130a   :  { %3603 = vmatprep.subr.bf16.mxu0 %v3793_v13 }
0x130d   :  { %3605 = vmatpush3.bf16.msra.mxu0 %v4641_v58 }
0x130e   :  { %3638 = vmatprep.subr.bf16.mxu0 %v3793_v13 }
0x131a   :  { %2371 = vperm.xlu0 %3679, %v2361_v46  }
0x131e   :  { %2499 = vrot.lane.b32.xlu0 %v4524_v60, %s3798_s4 }
0x1387   :  { %v2367_v49 = vpop.permute.xlu1 %2366 }
0x1388   :  { %v2374_v3 = vmul.f32 %v2367_v49, %v4362_v35 }
0x138a   :  { %v2376_v0 = vsel %vm53_vm0, %v2374_v3, 0.0 }
0x138b   :  { %v2377_v11 = vrot.slane %v2376_v0, 4 }
0x138d   :  { %v2378_v15 = vadd.f32 %v2377_v11, %v2376_v0 }
0x138f   :  { %v2379_v37 = vrot.slane %v2378_v15, 2 }
0x1391   :  { %v2012_v7 = vpop.xlane.xlu0 %2011  ;;  %v2380_v57 = vadd.f32 %v2379_v37, %v2378_v15 }
0x1392   :  { %v2013_v10 = vcvt.f32.s32 %v2012_v7 }
0x1394   :  { %v2016_v2 = vadd.s32 %v2015_v9, %v2013_v10 }
0x1396   :  { %vm2017_vm3 = vcmp.eq.s32.totalorder %v4162_v52, %v2016_v2 }
0x1397   :  { %3315 = vmatmul.mubr.msk.f32.vlgmr.msra.gmra.mrb[12].mxu0 %vm2017_vm3, %v3801_v56 }
0x1398   :  { %3640 = vmatpush3.bf16.msra.mxu0 %v4464_v62  ;;  %3374 = vmatprep.mubr.msk.f32.mxu0 %vm3794_vm2, %v3795_v17  ;;  %v2381_v62 = vrot.slane %v2380_v57, 1 }
0x1399   :  { %v2372_v8 = vpop.permute.xlu0 %2371  ;;  %3641 = vmatprep.subr.bf16.mxu0 %v3793_v13 }
0x139a   :  { %v2375_v35 = vmul.f32 %v2372_v8, %v4371_v14  ;;  %v2382_v39 = vadd.f32 %v2381_v62, %v2380_v57 }
0x139c   :  { %v2383_v1 = vsel %vm53_vm0, %v2375_v35, 0.0  ;;  %3643 = vmatpush3.bf16.msra.mxu0 %v4470_v45 }
0x139d   :  { %v2384_v48 = vrot.slane %v2383_v1, 4  ;;  %3644 = vmatprep.subr.bf16.mxu0 %v3793_v13  ;;  %v2500_v6 = vpop.permute.xlu0 %2499 }
0x139f   :  { %v2385_v19 = vadd.f32 %v2384_v48, %v2383_v1 }
0x13a1   :  { %v2386_v25 = vrot.slane %v2385_v19, 2 }
0x13a3   :  { %v2387_v30 = vadd.f32 %v2386_v25, %v2385_v19 }
0x13a5   :  { %v2388_v32 = vrot.slane %v2387_v30, 1 }
0x13a7   :  { %v2389_v12 = vadd.f32 %v2388_v32, %v2387_v30 }
0x13a9   :  { %v2392_v43 = vsel %vm442_vm5, %v2389_v12, %v2382_v39 }
0x13aa   :  { %2393 = vrot.lane.b32.xlu1 %v2392_v43, %s3799_s27 }
0x13ae   :  { %2489 = vrot.lane.b32.xlu1 %v4524_v60, %s3800_s28 }
0x141c   :  { %v2394_v16 = vpop.permute.xlu1 %2393 }
0x1420   :  { %v2490_v54 = vpop.permute.xlu1 %2489 }
0x146a   :  { %v2102_v14 = vpop.f32.mrb[12].mxu0 }
0x146b   :  { %2106 = vst.msk [vmem:[#allocation3] sm:$0x3] %vm154_vm4, %v2102_v14  ;;  %v3316_v45 = vpop.f32.mrb[13].mxu0 }
0x1472   :  { %v2108_v44 = vld [vmem:[#allocation3] sm:$0x3] }
0x1473   :  { %v2396_v38 = vsel %vm447_vm6, %v2108_v44, %v2394_v16 }
0x1474   :  { %3364 = vmatmul.mubr.msk.f32.vlgmr.msra.gmra.mrb[22].mxu1 %vm468_vm7, %v2396_v38 }
0x1547   :  { %v2485_v59 = vpop.f32.mrb[22].mxu1 }
0x1548   :  { %v2486_v4 = vadd.f32 %v4449_v20, %v2485_v59  ;;  %v3365_v47 = vpop.f32.mrb[23].mxu1 }
0x154a   :  { %v2492_v50 = vadd.f32 %v2490_v54, %v2486_v4 }
0x154c   :  { %v2824_v22 = vmul.f32 -1.442695, %v2492_v50 }
0x154e   :  { %3747 = vpow2.f32 %v2824_v22 }
0x1558   :  { %v3748_v61 = vpop.eup %3747 }
0x1559   :  { %v2496_v60 = vadd.f32 1.0, %v3748_v61 }
0x155b   :  { %3749 = vrcp.f32 %v2496_v60 }
0x1565   :  { %v3750_v26 = vpop.eup %3749 }
0x1566   :  { %v2502_v42 = vmul.f32 %v3750_v26, %v2500_v6  ;;  %v2509_v3 = vsub.f32 1.0, %v3750_v26 }
0x1568   :  { %2504 = vrot.lane.b32.xlu1 %v2502_v42, %s3799_s27 }
0x156c   :  { %2515 = vrot.lane.b32.xlu1 %v4494_v28, %s3798_s4  ;;  %s2760_s4 = sshll.u32 %s3802_s2, 4  ;;  %s2761_s4 = int_to_ptr.vmem [resolvable:$true] %s2760_s4 }
0x156d   :  { %p3774_p1 = scmp.lt.s32.totalorder %s2761_s4, %s2761_s4 }
0x15da   :  { %v2505_v63 = vpop.permute.xlu1 %2504 }
0x15db   :  { %v2507_v46 = vadd.f32 %v2505_v63, %v2486_v4 }
0x15dd   :  { %3751 = vtanh.f32 %v2507_v46 }
0x15de   :  { %v2516_v49 = vpop.permute.xlu1 %2515 }
0x15df   :  { %v2518_v0 = vmul.f32 %v3750_v26, %v2516_v49 }
0x15e7   :  { %v3752_v20 = vpop.eup %3751 }
0x15e8   :  { %2511 = vrot.lane.b32.xlu0 %v3752_v20, %s3800_s28 }
0x165a   :  { %v2512_v5 = vpop.permute.xlu0 %2511 }
0x165b   :  { %v2514_v7 = vmul.f32 %v2512_v5, %v2509_v3 }
0x165d   :  { %v2519_v9 = vadd.f32 %v2518_v0, %v2514_v7 }
0x165f   :  { %2521 = vrot.lane.b32.xlu0 %v2519_v9, %s3800_s28  ;;  %s3769_s28 = scalar_lea.vmem %s2761_s4, 128 }
0x1660   :  { %p3770_p0 = scmp.ne.s32.totalorder %s2761_s4, %s3769_s28  ;;  %p3775_p2 = scmp.lt.s32.totalorder %s3769_s28, %s3769_s28 }
0x1662   :  { %p3776_p3 = por %p3775_p2, %p3774_p1 }
0x1664   :  { %p3777_p4 = pnand %p3776_p3, %p3770_p0 }
0x16d1   :  { %v2522_v10 = vpop.permute.xlu0 %2521 }
0x16d2   :  { %2524 = vst.msk [vmem:[#allocation2] sm:$0x3] %vm147_vm1, %v2522_v10  ;;  %3375 = vmatmul.mubr.msk.f32.vlgmr.msra.gmra.mrb[14].mxu0 %vm53_vm0, %v2522_v10 }
0x16d3   :  { %3646 = vmatpush3.bf16.msra.mxu0 %v4568_v29  ;;  %3409 = vmatprep.mubr.msk.f32.mxu0 %vm3794_vm2, %v3795_v17  ;;  %v665_v17 = vsub.f32 %v4130_v23, %v4164_v55  ;;  %v1963_v29 = vsub.f32 %v4517_v31, %v4547_v41 }
0x16d4   :  { %3647 = vmatprep.subr.bf16.mxu0 %v3793_v13 }
0x16d5   :  { %v666_v28 = vmul.f32 1.442695, %v665_v17 }
0x16d7   :  { %3649 = vmatpush3.bf16.msra.mxu0 %v4574_v27  ;;  %3753 = vpow2.f32 %v666_v28  ;;  %v1964_v27 = vmul.f32 1.442695, %v1963_v29 }
0x16d8   :  { %3650 = vmatprep.subr.bf16.mxu0 %v3793_v13 }
0x16d9   :  { %3755 = vpow2.f32 %v1964_v27 }
0x16db   :  { %3652 = vmatpush3.bf16.msra.mxu0 %v4584_v33 }
0x16dc   :  { %3653 = vmatprep.subr.bf16.mxu0 %v3793_v13 }
0x16df   :  { %3655 = vmatpush3.bf16.msra.mxu0 %v4594_v40 }
0x16e0   :  { %3656 = vmatprep.subr.bf16.mxu0 %v3793_v13 }
0x16e3   :  { %3658 = vmatpush3.bf16.msra.mxu0 %v4611_v53 }
0x16e4   :  { %3659 = vmatprep.subr.bf16.mxu0 %v3793_v13 }
0x16e7   :  { %3661 = vmatpush3.bf16.msra.mxu0 %v4621_v51  ;;  %v3754_v51 = vpop.eup %3753 }
0x16e8   :  { %3662 = vmatprep.subr.bf16.mxu0 %v3793_v13 }
0x16eb   :  { %3664 = vmatpush3.bf16.msra.mxu0 %v4631_v34  ;;  %v668_v34 = vsel %vm661_vm8, %v3754_v51, 0.0 }
0x16ec   :  { %3665 = vmatprep.subr.bf16.mxu0 %v3793_v13 }
0x16ef   :  { %3667 = vmatpush3.bf16.msra.mxu0 %v4641_v58  ;;  %v3756_v58 = vpop.eup %3755 }
0x16f0   :  { %v1966_v11 = vsel %vm661_vm8, %v3756_v58, 0.0 }
0x17a5   :  { %v2604_v33 = vpop.f32.mrb[14].mxu0 }
0x17a6   :  { %v4696_v40 = vadd.f32 %v4514_v21, %v2604_v33  ;;  %v3376_v53 = vpop.f32.mrb[15].mxu0 }
0x17a8   :  { %v2608_v13 = vsel %vm661_vm8, %v4696_v40, -inf }
0x17a9   :  { %2609 = vmax.xlane.f32.xlu1 %v2608_v13 }
0x17ad   :  { %669 = vadd.xlane.f32.xlu1 %v668_v34 }
0x17b1   :  { %1967 = vadd.xlane.f32.xlu1 %v1966_v11 }
0x1836   :  { %v4702_v2 = vpop.xlane.xlu1 %2609 }
0x1837   :  { %vm2648_vm0 = vcmp.eq.f32.partialorder %v4696_v40, %v4702_v2 }
0x1838   :  { %v2649_v21 = vsel %vm2648_vm0, %v4162_v52, 128 }
0x1839   :  { %v2650_v15 = vsel %vm661_vm8, %v2649_v21, 2147483647 }
0x183a   :  { %v670_v8 = vpop.xlane.xlu1 %669  ;;  %v2652_v35 = vshra.s32 %v2650_v15, 16  ;;  %v2651_v44 = vand.u32 65535, %v2650_v15 }
0x183b   :  { %3757 = vlog2.f32 %v670_v8 }
0x183c   :  { %v2654_v37 = vcvt.s32.f32 %v2652_v35  ;;  %v2653_v38 = vcvt.s32.f32 %v2651_v44 }
0x183e   :  { %2655 = vmin.xlane.f32.xlu0 %v2654_v37  ;;  %v1968_v1 = vpop.xlane.xlu1 %1967 }
0x183f   :  { %3759 = vlog2.f32 %v1968_v1 }
0x1845   :  { %v3758_v48 = vpop.eup %3757 }
0x1846   :  { %v672_v57 = vmul.f32 0.6931472, %v3758_v48 }
0x1848   :  { %v673_v25 = vadd.f32 %v672_v57, %v4164_v55  ;;  %v1315_v55 = vsub.f32 %v4326_v24, %v4345_v18 }
0x1849   :  { %v3760_v19 = vpop.eup %3759 }
0x184a   :  { %v1970_v62 = vmul.f32 0.6931472, %v3760_v19  ;;  %v674_v30 = vsub.f32 %v4130_v23, %v673_v25  ;;  %v1316_v16 = vmul.f32 1.442695, %v1315_v55  ;;  %v2611_v23 = vsub.f32 %v4696_v40, %v4702_v2 }
0x184c   :  { %v1971_v32 = vadd.f32 %v1970_v62, %v4547_v41  ;;  %v682_v39 = vrot.slane %v674_v30, %v3968_v36  ;;  %3761 = vpow2.f32 %v1316_v16  ;;  %v2612_v41 = vmul.f32 1.442695, %v2611_v23 }
0x184e   :  { %v1972_v12 = vsub.f32 %v4517_v31, %v1971_v32  ;;  %v683_v43 = vcombine.high %v682_v39, %v682_v39  ;;  %2785 = vst.sshfl [vmem:[#allocation6] sm:$0x1 pattern:$0x73625140] %v682_v39  ;;  %3763 = vpow2.f32 %v2612_v41 }
0x1850   :  { %v1980_v14 = vrot.slane %v1972_v12, %v3968_v36  ;;  %2786 = vst.sshfl [vmem:[#allocation6 + $0x4] sm:$0x1 pattern:$0x73625140] %v683_v43 }
0x1852   :  { %v1981_v45 = vcombine.high %v1980_v14, %v1980_v14  ;;  %2813 = vst.sshfl [vmem:[#allocation6 + $0x2] sm:$0x1 pattern:$0x73625140] %v1980_v14 }
0x1854   :  { %2814 = vst.sshfl [vmem:[#allocation6 + $0x6] sm:$0x1 pattern:$0x73625140] %v1981_v45 }
0x1856   :  { %v3762_v4 = vpop.eup %3761 }
0x1857   :  { %v1318_v47 = vsel %vm661_vm8, %v3762_v4, 0.0 }
0x1858   :  { %v3764_v54 = vpop.eup %3763 }
0x1859   :  { %v2614_v50 = vsel %vm661_vm8, %v3764_v54, 0.0 }
0x18cb   :  { %v2656_v31 = vpop.xlane.xlu0 %2655 }
0x18cc   :  { %vm2657_vm1 = vcmp.eq.f32.partialorder %v2654_v37, %v2656_v31  ;;  %v2662_v22 = vcvt.f32.s32 %v2656_v31 }
0x18cd   :  { %v2658_v59 = vsel %vm2657_vm1, %v2653_v38, inf }
0x18ce   :  { %2659 = vmin.xlane.f32.xlu0 %v2658_v59  ;;  %v2663_v60 = vshll.u32 %v2662_v22, 16 }
0x18d2   :  { %1319 = vadd.xlane.f32.xlu0 %v1318_v47 }
0x18d6   :  { %2615 = vadd.xlane.f32.xlu0 %v2614_v50 }
0x195b   :  { %v2660_v61 = vpop.xlane.xlu0 %2659 }
0x195c   :  { %v2661_v26 = vcvt.f32.s32 %v2660_v61 }
0x195e   :  { %v2664_v6 = vadd.s32 %v2663_v60, %v2661_v26 }
0x195f   :  { %v1320_v42 = vpop.xlane.xlu0 %1319 }
0x1960   :  { %vm2665_vm2 = vcmp.eq.s32.totalorder %v4162_v52, %v2664_v6  ;;  %3765 = vlog2.f32 %v1320_v42 }
0x1961   :  { %3410 = vmatmul.mubr.msk.f32.vlgmr.msra.gmra.mrb[16].mxu0 %vm2665_vm2, %v3801_v56 }
0x1963   :  { %v2616_v63 = vpop.xlane.xlu0 %2615 }
0x1964   :  { %3767 = vlog2.f32 %v2616_v63 }
0x196a   :  { %v3766_v46 = vpop.eup %3765 }
0x196b   :  { %v1322_v20 = vmul.f32 0.6931472, %v3766_v46 }
0x196d   :  { %v1323_v49 = vadd.f32 %v1322_v20, %v4345_v18 }
0x196e   :  { %v3768_v3 = vpop.eup %3767 }
0x196f   :  { %v1324_v5 = vsub.f32 %v4326_v24, %v1323_v49  ;;  %v2618_v0 = vmul.f32 0.6931472, %v3768_v3 }
0x1971   :  { %v1332_v7 = vrot.slane %v1324_v5, %v3968_v36  ;;  %v2619_v9 = vadd.f32 %v2618_v0, %v4702_v2 }
0x1973   :  { %v1333_v10 = vcombine.high %v1332_v7, %v1332_v7  ;;  %2799 = vst.sshfl [vmem:[#allocation6 + $0x1] sm:$0x1 pattern:$0x73625140] %v1332_v7  ;;  %v2620_v52 = vsub.f32 %v4696_v40, %v2619_v9 }
0x1975   :  { %2800 = vst.sshfl [vmem:[#allocation6 + $0x5] sm:$0x1 pattern:$0x73625140] %v1333_v10  ;;  %v2628_v56 = vrot.slane %v2620_v52, %v3968_v36 }
0x1977   :  { %v2629_v17 = vcombine.high %v2628_v56, %v2628_v56  ;;  %2827 = vst.sshfl [vmem:[#allocation6 + $0x3] sm:$0x1 pattern:$0x73625140] %v2628_v56 }
0x1979   :  { %2828 = vst.sshfl [vmem:[#allocation6 + $0x7] sm:$0x1 pattern:$0x73625140] %v2629_v17 }
0x197a   :  { %3780 = shalt.err (!%p3777_p4)
}
0x197b   :  { %s3781_s19 = scalar_lea.hbm %s4756_s13, 128 }
0x197c   :  { %p3782_p5 = scmp.ne.s32.totalorder %s4756_s13, %s3781_s19  ;;  %p3785_p6 = scmp.lt.u32.totalorder %s3781_s19, %s4756_s13 }
0x197e   :  { %p3787_p7 = pnand %p3785_p6, %p3782_p5 }
0x1980   :  { %3790 = shalt.err (!%p3787_p7)
}
0x1981   :  { %s3803_s22 = smov 4  }
0x1982   :  { %2766 = dma.vmem_to_hbm [thread:$0]  %s2761_s4, 128, %s4756_s13, [#allocation7], %s3799_s27, %s3799_s27, %s3803_s22  }
0x1a34   :  { %v2750_v36 = vpop.f32.mrb[16].mxu0 }
0x1a35   :  { %2754 = vst.msk [vmem:[#allocation3] sm:$0x3] %vm154_vm4, %v2750_v36  ;;  %v3411_v24 = vpop.f32.mrb[17].mxu0 }
0x1a36   :  { %3791 = dma.done.wait [#allocation7], 128  }
0x1a37   :  { %3792 = vsyncadd [#allocation7], 4294967168 }
0x1a38   :  { %2770 = vsyncpa [#allocation7], 1 }

</bundles_post_ra>
